<compile_context>
chip_gen: v7x
topology: tpu7x:2x2x1
jax: 0.10.0
libtpu: 0.0.40
codegen_flags: <defaults>
</compile_context>

<pallas_src>
import functools

import jax
import jax.numpy as jnp
from jax import lax
from jax.experimental import pallas as pl
from jax.experimental.pallas import tpu as pltpu


DILATION_RATES = (2, 5, 9)


# ----------------------------------------------------------------------------
# Pallas kernels
# ----------------------------------------------------------------------------
def _conv1_fused_kernel(xp_ref, a_ref, b_ref, bn_ref, hp_ref, *, H, L, pad_out):
    """Fused ConvBnReLU2d(3x1) -> ConvBnReLU2d(1x3) for one image.

    xp_ref : (1, H+2, L) f32   input, H-padded by 1 (L = W*C lane-flattened)
    a_ref  : (3, L, L)  bf16   per-tap vertical channel-mix matrices kron(I_W, Wk)
    b_ref  : (L, L)     bf16   banded horizontal conv matrix (3 taps + W zero-pad)
    bn_ref : (4, L)     f32    [scale_a, bias_a, scale_b, bias_b] lane vectors
    hp_ref : (1, H+2*pad_out, L) bf16  output, written pre-padded along H
    """
    acc = jnp.zeros((H, L), jnp.float32)
    for k in range(3):                                        # static 3-tap unroll
        slab = xp_ref[0, k:k + H, :].astype(jnp.bfloat16)
        acc += jnp.dot(slab, a_ref[k], preferred_element_type=jnp.float32)

    bn = bn_ref[...]
    v = jnp.maximum(acc * bn[0:1, :] + bn[1:2, :], 0.0)       # BN + ReLU (f32)
    hmat = jnp.dot(v.astype(jnp.bfloat16), b_ref[...],
                   preferred_element_type=jnp.float32)        # full 1x3 conv
    hmat = jnp.maximum(hmat * bn[2:3, :] + bn[3:4, :], 0.0)   # BN + ReLU (f32)

    # Emit the output already zero-padded along H (halo for the branch kernel),
    # so no jnp.pad / extra HBM round trip is needed between the two kernels.
    zeros = jnp.zeros((pad_out, L), hp_ref.dtype)
    hp_ref[0, :pad_out, :] = zeros
    hp_ref[0, pad_out:pad_out + H, :] = hmat.astype(hp_ref.dtype)
    hp_ref[0, pad_out + H:, :] = zeros


def _branches_residual_kernel(hp_ref, xp_ref, a_ref, b_ref, bn_ref, o_ref,
                              *, H, L, dilations, pad_in, res_pad):
    """All dilated branches + branch sum + residual + final ReLU for one image.

    hp_ref : (1, H+2*pad_in, L) bf16  conv1 output (pre-padded along H)
    xp_ref : (1, H+2*res_pad, L) f32  original input (residual lives at
                                      rows [res_pad, res_pad+H))
    a_ref  : (nb*3, L, L) bf16  vertical kron matrices per (branch, tap)
    b_ref  : (nb,  L, L) bf16   banded horizontal matrices per branch
    bn_ref : (nb, 4, L)  f32    BN lane vectors per branch
    o_ref  : (1, H, L)   f32    final PFCU output
    """
    total = xp_ref[0, res_pad:res_pad + H, :]                 # residual, f32
    for bi, d in enumerate(dilations):                        # static unroll
        acc = jnp.zeros((H, L), jnp.float32)
        for k in range(3):
            start = pad_in + (k - 1) * d
            acc += jnp.dot(hp_ref[0, start:start + H, :], a_ref[3 * bi + k],
                           preferred_element_type=jnp.float32)
        bn = bn_ref[bi]
        v = jnp.maximum(acc * bn[0:1, :] + bn[1:2, :], 0.0)   # BN + ReLU
        y = jnp.dot(v.astype(jnp.bfloat16), b_ref[bi],
                    preferred_element_type=jnp.float32)
        total = total + (y * bn[2:3, :] + bn[3:4, :])         # BN (no ReLU) + sum

    # TODO(synk): Dropout2d(p=0.01) is identity in eval mode; training-mode
    # channel dropout is not implemented.
    o_ref[0, :, :] = jnp.maximum(total, 0.0).astype(o_ref.dtype)


# ----------------------------------------------------------------------------
# Parameter construction (deterministic, synthetic) with BN folding
# ----------------------------------------------------------------------------
def make_conv_bn_params(key, c_in, c_out, eps=1e-5):
    kw, kg, kb, km, kv = jax.random.split(key, 5)
    w = jax.random.normal(kw, (3, c_in, c_out), jnp.float32) * 0.2
    gamma = jax.random.uniform(kg, (c_out,), jnp.float32, 0.5, 1.5)
    beta = jax.random.normal(kb, (c_out,), jnp.float32) * 0.1
    mean = jax.random.normal(km, (c_out,), jnp.float32) * 0.1
    var = jax.random.uniform(kv, (c_out,), jnp.float32, 0.5, 1.5)
    scale = gamma / jnp.sqrt(var + eps)
    bias = beta - mean * scale
    return w, scale.reshape(1, c_out), bias.reshape(1, c_out)


def make_pfcu_params(key, c_in, c_out, dilation_rates):
    assert c_in == c_out, "PFCU residual add requires in_channels == out_channels"
    keys = jax.random.split(key, 2 + 2 * len(dilation_rates))
    params = {
        "conv1_a": make_conv_bn_params(keys[0], c_in, c_out),
        "conv1_b": make_conv_bn_params(keys[1], c_out, c_out),
    }
    for i, _ in enumerate(dilation_rates):
        params[f"branch{i}_a"] = make_conv_bn_params(keys[2 + 2 * i], c_out, c_out)
        params[f"branch{i}_b"] = make_conv_bn_params(keys[3 + 2 * i], c_out, c_out)
    return params


def pack_pfcu_params(params, width, dilations=DILATION_RATES):
    """Build lane-space (kron / banded) conv matrices and tiled BN vectors."""
    eye_w = jnp.eye(width, dtype=jnp.float32)

    def lane_bn(scale, bias):                         # (1,C) -> (2, W*C)
        return jnp.stack([jnp.tile(scale.reshape(-1), width),
                          jnp.tile(bias.reshape(-1), width)])

    def vert(wk):                                     # (3,C,C) -> (3, L, L)
        return jnp.stack([jnp.kron(eye_w, wk[k]) for k in range(3)])

    def horiz(wk, d):                                 # (3,C,C) -> (L, L), banded
        mats = [jnp.kron(jnp.eye(width, k=-(k - 1) * d, dtype=jnp.float32), wk[k])
                for k in range(3)]
        return mats[0] + mats[1] + mats[2]

    w1a, s1a, b1a = params["conv1_a"]
    w1b, s1b, b1b = params["conv1_b"]
    packed = {
        "a1": vert(w1a).astype(jnp.bfloat16),
        "b1": horiz(w1b, 1).astype(jnp.bfloat16),
        "bn1": jnp.concatenate([lane_bn(s1a, b1a), lane_bn(s1b, b1b)], axis=0),
    }
    a2, b2, bn2 = [], [], []
    for i, d in enumerate(dilations):
        wa, sa, ba = params[f"branch{i}_a"]
        wb, sb, bb = params[f"branch{i}_b"]
        a2.append(vert(wa))
        b2.append(horiz(wb, d))
        bn2.append(jnp.concatenate([lane_bn(sa, ba), lane_bn(sb, bb)], axis=0))
    packed["a2"] = jnp.concatenate(a2, axis=0).astype(jnp.bfloat16)   # (nb*3,L,L)
    packed["b2"] = jnp.stack(b2).astype(jnp.bfloat16)                 # (nb, L, L)
    packed["bn2"] = jnp.stack(bn2)                                    # (nb, 4, L)
    return packed


# ----------------------------------------------------------------------------
# Forward pass (2 fused pallas_calls)
# ----------------------------------------------------------------------------
def _full_spec(shape):
    zeros = (0,) * len(shape)
    return pl.BlockSpec(shape, lambda i, _z=zeros: _z)


_COMPILER_PARAMS = pltpu.CompilerParams(
    dimension_semantics=("parallel",),          # batch axis -> both v7x TCs
    vmem_limit_bytes=32 * 1024 * 1024)


def pfcu_forward_pallas(x_nhwc, packed, dilations=DILATION_RATES):
    n, h, w, c = x_nhwc.shape
    L = w * c
    nb = len(dilations)
    dmax = max(dilations)
    pad_h = ((dmax + 7) // 8) * 8               # sublane-aligned H halo
    hp_rows = h + 2 * pad_h

    x2 = x_nhwc.reshape(n, h, L)                # NHWC -> lane-dense (N, H, W*C)
    # TODO(synk): this 1-row halo pad of the module input could also be folded
    # into an upstream producer kernel; kept as a single tiny jnp.pad here.
    xp = jnp.pad(x2, ((0, 0), (1, 1), (0, 0)))  # vertical halo for conv1 (3x1)

    itemsize = {jnp.dtype(jnp.float32): 4, jnp.dtype(jnp.bfloat16): 2}

    # ---- kernel 1: conv1 (3x1 + 1x3), output pre-padded along H -------------
    k1 = functools.partial(_conv1_fused_kernel, H=h, L=L, pad_out=pad_h)
    k1_weight_bytes = (packed["a1"].size + packed["b1"].size) * 2 + packed["bn1"].size * 4
    hp = pl.pallas_call(
        k1,
        out_shape=jax.ShapeDtypeStruct((n, hp_rows, L), jnp.bfloat16),
        grid=(n,),
        in_specs=[pl.BlockSpec((1, h + 2, L), lambda i: (i, 0, 0)),
                  _full_spec(packed["a1"].shape),
                  _full_spec(packed["b1"].shape),
                  _full_spec(packed["bn1"].shape)],
        out_specs=pl.BlockSpec((1, hp_rows, L), lambda i: (i, 0, 0)),
        compiler_params=_COMPILER_PARAMS,
        cost_estimate=pl.CostEstimate(
            flops=2 * n * h * L * L * 4,
            transcendentals=0,
            bytes_accessed=int(xp.size * 4 + n * hp_rows * L * 2 + k1_weight_bytes)),
    )(xp, packed["a1"], packed["b1"], packed["bn1"])

    # ---- kernel 2: all dilated branches + branch sum + residual + ReLU ------
    k2 = functools.partial(_branches_residual_kernel, H=h, L=L,
                           dilations=tuple(dilations), pad_in=pad_h, res_pad=1)
    k2_weight_bytes = (packed["a2"].size + packed["b2"].size) * 2 + packed["bn2"].size * 4
    out2 = pl.pallas_call(
        k2,
        out_shape=jax.ShapeDtypeStruct((n, h, L), x_nhwc.dtype),
        grid=(n,),
        in_specs=[pl.BlockSpec((1, hp_rows, L), lambda i: (i, 0, 0)),
                  pl.BlockSpec((1, h + 2, L), lambda i: (i, 0, 0)),
                  _full_spec(packed["a2"].shape),
                  _full_spec(packed["b2"].shape),
                  _full_spec(packed["bn2"].shape)],
        out_specs=pl.BlockSpec((1, h, L), lambda i: (i, 0, 0)),
        compiler_params=_COMPILER_PARAMS,
        cost_estimate=pl.CostEstimate(
            flops=2 * n * h * L * L * 4 * nb,
            transcendentals=0,
            bytes_accessed=int(n * hp_rows * L * 2 + xp.size * 4
                               + n * h * L * 4 + k2_weight_bytes)),
    )(hp, xp, packed["a2"], packed["b2"], packed["bn2"])

    return out2.reshape(n, h, w, c)


# ----------------------------------------------------------------------------
# Pure-JAX reference (matched to the kernels' bf16-operand / f32-acc MXU path)
# ----------------------------------------------------------------------------
def _ref_sep_conv_bn(x, w, scale, bias, *, axis, dilation, relu):
    c_in, c_out = w.shape[1], w.shape[2]
    if axis == 1:
        wk = w.reshape(3, 1, c_in, c_out)
        rhs_dil, padding = (dilation, 1), ((dilation, dilation), (0, 0))
    else:
        wk = w.reshape(1, 3, c_in, c_out)
        rhs_dil, padding = (1, dilation), ((0, 0), (dilation, dilation))
    y = lax.conv_general_dilated(
        x.astype(jnp.bfloat16), wk.astype(jnp.bfloat16),
        window_strides=(1, 1), padding=padding, rhs_dilation=rhs_dil,
        dimension_numbers=("NHWC", "HWIO", "NHWC"),
        preferred_element_type=jnp.float32)
    y = y * scale.reshape(1, 1, 1, -1) + bias.reshape(1, 1, 1, -1)
    return jnp.maximum(y, 0.0) if relu else y


def pfcu_forward_ref(x_nhwc, params, dilations=DILATION_RATES):
    h = _ref_sep_conv_bn(x_nhwc, *params["conv1_a"], axis=1, dilation=1, relu=True)
    h = _ref_sep_conv_bn(h, *params["conv1_b"], axis=2, dilation=1, relu=True)
    acc = None
    for i, d in enumerate(dilations):
        b = _ref_sep_conv_bn(h, *params[f"branch{i}_a"], axis=1, dilation=d, relu=True)
        b = _ref_sep_conv_bn(b, *params[f"branch{i}_b"], axis=2, dilation=d, relu=False)
        acc = b if acc is None else acc + b
    return jnp.maximum(acc + x_nhwc, 0.0)


# ----------------------------------------------------------------------------
if __name__ == "__main__":
    key = jax.random.PRNGKey(0)
    k_x, k_p = jax.random.split(key)

    N, C, H, W = 2, 4, 16, 16            # in_channels == out_channels (residual)
    x_nchw = jax.random.normal(k_x, (N, C, H, W), jnp.float32)
    x_nhwc = jnp.transpose(x_nchw, (0, 2, 3, 1))

    params = make_pfcu_params(k_p, C, C, DILATION_RATES)
    packed = pack_pfcu_params(params, W, DILATION_RATES)

    fwd = jax.jit(functools.partial(pfcu_forward_pallas, dilations=DILATION_RATES))
    out_nhwc = jax.block_until_ready(fwd(x_nhwc, packed))
    out_nchw = jnp.transpose(out_nhwc, (0, 3, 1, 2))   # back to PyTorch layout

    ref_nhwc = pfcu_forward_ref(x_nhwc, params)
    assert out_nchw.shape == (N, C, H, W)
    # bf16-operand / f32-accumulate MXU path; tolerance loosened vs. the old
    # 1e-4 HIGHEST-precision check per the review's test-parity note.
    assert jnp.allclose(out_nhwc, ref_nhwc, atol=5e-2, rtol=5e-2), (
        float(jnp.max(jnp.abs(out_nhwc - ref_nhwc))))

    print("KERNEL_OK")
</pallas_src>

<mosaic_0001>
module attributes {stable_mosaic.version = 11 : i64} {
  func.func @_conv1_fused_kernel(%arg0: i32, %arg1: memref<1x18x64xf32, #tpu.memory_space<vmem>>, %arg2: memref<3x64x64xbf16, #tpu.memory_space<vmem>>, %arg3: memref<64x64xbf16, #tpu.memory_space<vmem>>, %arg4: memref<4x64xf32, #tpu.memory_space<vmem>>, %arg5: memref<1x48x64xbf16, #tpu.memory_space<vmem>>) attributes {dimension_semantics = [#tpu.dimension_semantics<parallel>], iteration_bounds = array<i64: 2>, scalar_prefetch = 0 : i64, scratch_operands = 0 : i64, tpu.core_type = #tpu.core_type<tc>, window_params = [{transform_indices = @transform_0, window_bounds = array<i64: 1, 18, 64>}, {pipeline_mode = #tpu.pipeline_mode<synchronous>, transform_indices = @transform_1, window_bounds = array<i64: 3, 64, 64>}, {pipeline_mode = #tpu.pipeline_mode<synchronous>, transform_indices = @transform_2, window_bounds = array<i64: 64, 64>}, {pipeline_mode = #tpu.pipeline_mode<synchronous>, transform_indices = @transform_3, window_bounds = array<i64: 4, 64>}, {transform_indices = @transform_4, window_bounds = array<i64: 1, 48, 64>}]} {
    %cst = arith.constant 0.000000e+00 : f32
    %0 = vector.broadcast %cst : f32 to vector<16x64xf32>
    %c0 = arith.constant 0 : index
    %c0_0 = arith.constant 0 : index
    %c0_1 = arith.constant 0 : index
    %1 = vector.load %arg1[%c0, %c0_0, %c0_1] : memref<1x18x64xf32, #tpu.memory_space<vmem>>, vector<1x16x64xf32>
    %2 = vector.shape_cast %1 : vector<1x16x64xf32> to vector<16x64xf32>
    %3 = arith.truncf %2 : vector<16x64xf32> to vector<16x64xbf16>
    %c0_2 = arith.constant 0 : index
    %c0_3 = arith.constant 0 : index
    %c0_4 = arith.constant 0 : index
    %4 = vector.load %arg2[%c0_2, %c0_3, %c0_4] : memref<3x64x64xbf16, #tpu.memory_space<vmem>>, vector<1x64x64xbf16>
    %5 = vector.shape_cast %4 : vector<1x64x64xbf16> to vector<64x64xbf16>
    %cst_5 = arith.constant dense<0.000000e+00> : vector<16x64xf32>
    %6 = tpu.matmul %3, %5, %cst_5 {dimension_numbers = #tpu.dot_dimension_numbers<[1], [0], [0], [1], [0, 0, 1, 1], [], []>} : vector<16x64xbf16>, vector<64x64xbf16>, vector<16x64xf32> -> vector<16x64xf32>
    %7 = arith.addf %0, %6 : vector<16x64xf32>
    %c0_6 = arith.constant 0 : index
    %c1 = arith.constant 1 : index
    %c0_7 = arith.constant 0 : index
    %8 = vector.load %arg1[%c0_6, %c1, %c0_7] : memref<1x18x64xf32, #tpu.memory_space<vmem>>, vector<1x16x64xf32>
    %9 = vector.shape_cast %8 : vector<1x16x64xf32> to vector<16x64xf32>
    %10 = arith.truncf %9 : vector<16x64xf32> to vector<16x64xbf16>
    %c1_8 = arith.constant 1 : index
    %c0_9 = arith.constant 0 : index
    %c0_10 = arith.constant 0 : index
    %11 = vector.load %arg2[%c1_8, %c0_9, %c0_10] : memref<3x64x64xbf16, #tpu.memory_space<vmem>>, vector<1x64x64xbf16>
    %12 = vector.shape_cast %11 : vector<1x64x64xbf16> to vector<64x64xbf16>
    %cst_11 = arith.constant dense<0.000000e+00> : vector<16x64xf32>
    %13 = tpu.matmul %10, %12, %cst_11 {dimension_numbers = #tpu.dot_dimension_numbers<[1], [0], [0], [1], [0, 0, 1, 1], [], []>} : vector<16x64xbf16>, vector<64x64xbf16>, vector<16x64xf32> -> vector<16x64xf32>
    %14 = arith.addf %7, %13 : vector<16x64xf32>
    %c0_12 = arith.constant 0 : index
    %c2 = arith.constant 2 : index
    %c0_13 = arith.constant 0 : index
    %15 = vector.load %arg1[%c0_12, %c2, %c0_13] : memref<1x18x64xf32, #tpu.memory_space<vmem>>, vector<1x16x64xf32>
    %16 = vector.shape_cast %15 : vector<1x16x64xf32> to vector<16x64xf32>
    %17 = arith.truncf %16 : vector<16x64xf32> to vector<16x64xbf16>
    %c2_14 = arith.constant 2 : index
    %c0_15 = arith.constant 0 : index
    %c0_16 = arith.constant 0 : index
    %18 = vector.load %arg2[%c2_14, %c0_15, %c0_16] : memref<3x64x64xbf16, #tpu.memory_space<vmem>>, vector<1x64x64xbf16>
    %19 = vector.shape_cast %18 : vector<1x64x64xbf16> to vector<64x64xbf16>
    %cst_17 = arith.constant dense<0.000000e+00> : vector<16x64xf32>
    %20 = tpu.matmul %17, %19, %cst_17 {dimension_numbers = #tpu.dot_dimension_numbers<[1], [0], [0], [1], [0, 0, 1, 1], [], []>} : vector<16x64xbf16>, vector<64x64xbf16>, vector<16x64xf32> -> vector<16x64xf32>
    %21 = arith.addf %14, %20 : vector<16x64xf32>
    %c0_18 = arith.constant 0 : index
    %c0_19 = arith.constant 0 : index
    %22 = vector.load %arg4[%c0_18, %c0_19] : memref<4x64xf32, #tpu.memory_space<vmem>>, vector<4x64xf32>
    %23 = vector.extract_strided_slice %22 {offsets = [0, 0], sizes = [1, 64], strides = [1, 1]} : vector<4x64xf32> to vector<1x64xf32>
    %24 = vector.broadcast %23 : vector<1x64xf32> to vector<16x64xf32>
    %25 = arith.mulf %21, %24 : vector<16x64xf32>
    %26 = vector.extract_strided_slice %22 {offsets = [1, 0], sizes = [1, 64], strides = [1, 1]} : vector<4x64xf32> to vector<1x64xf32>
    %27 = vector.broadcast %26 : vector<1x64xf32> to vector<16x64xf32>
    %28 = arith.addf %25, %27 : vector<16x64xf32>
    %cst_20 = arith.constant 0.000000e+00 : f32
    %29 = vector.broadcast %cst_20 : f32 to vector<16x64xf32>
    %30 = arith.maximumf %28, %29 : vector<16x64xf32>
    %31 = arith.truncf %30 : vector<16x64xf32> to vector<16x64xbf16>
    %c0_21 = arith.constant 0 : index
    %c0_22 = arith.constant 0 : index
    %32 = vector.load %arg3[%c0_21, %c0_22] : memref<64x64xbf16, #tpu.memory_space<vmem>>, vector<64x64xbf16>
    %cst_23 = arith.constant dense<0.000000e+00> : vector<16x64xf32>
    %33 = tpu.matmul %31, %32, %cst_23 {dimension_numbers = #tpu.dot_dimension_numbers<[1], [0], [0], [1], [0, 0, 1, 1], [], []>} : vector<16x64xbf16>, vector<64x64xbf16>, vector<16x64xf32> -> vector<16x64xf32>
    %34 = vector.extract_strided_slice %22 {offsets = [2, 0], sizes = [1, 64], strides = [1, 1]} : vector<4x64xf32> to vector<1x64xf32>
    %35 = vector.broadcast %34 : vector<1x64xf32> to vector<16x64xf32>
    %36 = arith.mulf %33, %35 : vector<16x64xf32>
    %37 = vector.extract_strided_slice %22 {offsets = [3, 0], sizes = [1, 64], strides = [1, 1]} : vector<4x64xf32> to vector<1x64xf32>
    %38 = vector.broadcast %37 : vector<1x64xf32> to vector<16x64xf32>
    %39 = arith.addf %36, %38 : vector<16x64xf32>
    %cst_24 = arith.constant 0.000000e+00 : f32
    %40 = vector.broadcast %cst_24 : f32 to vector<16x64xf32>
    %41 = arith.maximumf %39, %40 : vector<16x64xf32>
    %cst_25 = arith.constant 0.000000e+00 : bf16
    %42 = vector.broadcast %cst_25 : bf16 to vector<16x64xbf16>
    %c0_26 = arith.constant 0 : index
    %c0_27 = arith.constant 0 : index
    %c0_28 = arith.constant 0 : index
    %43 = vector.load %arg5[%c0_26, %c0_27, %c0_28] : memref<1x48x64xbf16, #tpu.memory_space<vmem>>, vector<1x16x64xbf16>
    %44 = vector.shape_cast %43 : vector<1x16x64xbf16> to vector<16x64xbf16>
    %45 = vector.shape_cast %42 : vector<16x64xbf16> to vector<1x16x64xbf16>
    tpu.vector_store %arg5[%c0_26, %c0_27, %c0_28], %45 {strides = array<i32>} : memref<1x48x64xbf16, #tpu.memory_space<vmem>>, vector<1x16x64xbf16>,
    %46 = arith.truncf %41 : vector<16x64xf32> to vector<16x64xbf16>
    %c0_29 = arith.constant 0 : index
    %c16 = arith.constant 16 : index
    %c0_30 = arith.constant 0 : index
    %47 = vector.load %arg5[%c0_29, %c16, %c0_30] : memref<1x48x64xbf16, #tpu.memory_space<vmem>>, vector<1x16x64xbf16>
    %48 = vector.shape_cast %47 : vector<1x16x64xbf16> to vector<16x64xbf16>
    %49 = vector.shape_cast %46 : vector<16x64xbf16> to vector<1x16x64xbf16>
    tpu.vector_store %arg5[%c0_29, %c16, %c0_30], %49 {strides = array<i32>} : memref<1x48x64xbf16, #tpu.memory_space<vmem>>, vector<1x16x64xbf16>,
    %c0_31 = arith.constant 0 : index
    %c32 = arith.constant 32 : index
    %c0_32 = arith.constant 0 : index
    %50 = vector.load %arg5[%c0_31, %c32, %c0_32] : memref<1x48x64xbf16, #tpu.memory_space<vmem>>, vector<1x16x64xbf16>
    %51 = vector.shape_cast %50 : vector<1x16x64xbf16> to vector<16x64xbf16>
    %52 = vector.shape_cast %42 : vector<16x64xbf16> to vector<1x16x64xbf16>
    tpu.vector_store %arg5[%c0_31, %c32, %c0_32], %52 {strides = array<i32>} : memref<1x48x64xbf16, #tpu.memory_space<vmem>>, vector<1x16x64xbf16>,
    return
  }
  func.func @transform_0(%arg0: i32) -> (i32, i32, i32) {
    %c0_i32 = arith.constant 0 : i32
    %c0_i32_0 = arith.constant 0 : i32
    %c0_i32_1 = arith.constant 0 : i32
    return %arg0, %c0_i32, %c0_i32_0 : i32, i32, i32
  }
  func.func @transform_1(%arg0: i32) -> (i32, i32, i32) {
    %c0_i32 = arith.constant 0 : i32
    %c0_i32_0 = arith.constant 0 : i32
    %c0_i32_1 = arith.constant 0 : i32
    %c0_i32_2 = arith.constant 0 : i32
    return %c0_i32, %c0_i32_0, %c0_i32_1 : i32, i32, i32
  }
  func.func @transform_2(%arg0: i32) -> (i32, i32) {
    %c0_i32 = arith.constant 0 : i32
    %c0_i32_0 = arith.constant 0 : i32
    %c0_i32_1 = arith.constant 0 : i32
    return %c0_i32, %c0_i32_0 : i32, i32
  }
  func.func @transform_3(%arg0: i32) -> (i32, i32) {
    %c0_i32 = arith.constant 0 : i32
    %c0_i32_0 = arith.constant 0 : i32
    %c0_i32_1 = arith.constant 0 : i32
    return %c0_i32, %c0_i32_0 : i32, i32
  }
  func.func @transform_4(%arg0: i32) -> (i32, i32, i32) {
    %c0_i32 = arith.constant 0 : i32
    %c0_i32_0 = arith.constant 0 : i32
    %c0_i32_1 = arith.constant 0 : i32
    return %arg0, %c0_i32, %c0_i32_0 : i32, i32, i32
  }
}

module attributes {stable_mosaic.version = 11 : i64} {
  func.func @_branches_residual_kernel(%arg0: i32, %arg1: memref<1x48x64xbf16, #tpu.memory_space<vmem>>, %arg2: memref<1x18x64xf32, #tpu.memory_space<vmem>>, %arg3: memref<9x64x64xbf16, #tpu.memory_space<vmem>>, %arg4: memref<3x64x64xbf16, #tpu.memory_space<vmem>>, %arg5: memref<3x4x64xf32, #tpu.memory_space<vmem>>, %arg6: memref<1x16x64xf32, #tpu.memory_space<vmem>>) attributes {dimension_semantics = [#tpu.dimension_semantics<parallel>], iteration_bounds = array<i64: 2>, scalar_prefetch = 0 : i64, scratch_operands = 0 : i64, tpu.core_type = #tpu.core_type<tc>, window_params = [{transform_indices = @transform_0, window_bounds = array<i64: 1, 48, 64>}, {transform_indices = @transform_1, window_bounds = array<i64: 1, 18, 64>}, {pipeline_mode = #tpu.pipeline_mode<synchronous>, transform_indices = @transform_2, window_bounds = array<i64: 9, 64, 64>}, {pipeline_mode = #tpu.pipeline_mode<synchronous>, transform_indices = @transform_3, window_bounds = array<i64: 3, 64, 64>}, {pipeline_mode = #tpu.pipeline_mode<synchronous>, transform_indices = @transform_4, window_bounds = array<i64: 3, 4, 64>}, {transform_indices = @transform_5, window_bounds = array<i64: 1, 16, 64>}]} {
    %c0 = arith.constant 0 : index
    %c1 = arith.constant 1 : index
    %c0_0 = arith.constant 0 : index
    %0 = vector.load %arg2[%c0, %c1, %c0_0] : memref<1x18x64xf32, #tpu.memory_space<vmem>>, vector<1x16x64xf32>
    %1 = vector.shape_cast %0 : vector<1x16x64xf32> to vector<16x64xf32>
    %cst = arith.constant 0.000000e+00 : f32
    %2 = vector.broadcast %cst : f32 to vector<16x64xf32>
    %c0_1 = arith.constant 0 : index
    %c14 = arith.constant 14 : index
    %c0_2 = arith.constant 0 : index
    %3 = vector.load %arg1[%c0_1, %c14, %c0_2] : memref<1x48x64xbf16, #tpu.memory_space<vmem>>, vector<1x16x64xbf16>
    %4 = vector.shape_cast %3 : vector<1x16x64xbf16> to vector<16x64xbf16>
    %c0_3 = arith.constant 0 : index
    %c0_4 = arith.constant 0 : index
    %c0_5 = arith.constant 0 : index
    %5 = vector.load %arg3[%c0_3, %c0_4, %c0_5] : memref<9x64x64xbf16, #tpu.memory_space<vmem>>, vector<1x64x64xbf16>
    %6 = vector.shape_cast %5 : vector<1x64x64xbf16> to vector<64x64xbf16>
    %cst_6 = arith.constant dense<0.000000e+00> : vector<16x64xf32>
    %7 = tpu.matmul %4, %6, %cst_6 {dimension_numbers = #tpu.dot_dimension_numbers<[1], [0], [0], [1], [0, 0, 1, 1], [], []>} : vector<16x64xbf16>, vector<64x64xbf16>, vector<16x64xf32> -> vector<16x64xf32>
    %8 = arith.addf %2, %7 : vector<16x64xf32>
    %c0_7 = arith.constant 0 : index
    %c16 = arith.constant 16 : index
    %c0_8 = arith.constant 0 : index
    %9 = vector.load %arg1[%c0_7, %c16, %c0_8] : memref<1x48x64xbf16, #tpu.memory_space<vmem>>, vector<1x16x64xbf16>
    %10 = vector.shape_cast %9 : vector<1x16x64xbf16> to vector<16x64xbf16>
    %c1_9 = arith.constant 1 : index
    %c0_10 = arith.constant 0 : index
    %c0_11 = arith.constant 0 : index
    %11 = vector.load %arg3[%c1_9, %c0_10, %c0_11] : memref<9x64x64xbf16, #tpu.memory_space<vmem>>, vector<1x64x64xbf16>
    %12 = vector.shape_cast %11 : vector<1x64x64xbf16> to vector<64x64xbf16>
    %cst_12 = arith.constant dense<0.000000e+00> : vector<16x64xf32>
    %13 = tpu.matmul %10, %12, %cst_12 {dimension_numbers = #tpu.dot_dimension_numbers<[1], [0], [0], [1], [0, 0, 1, 1], [], []>} : vector<16x64xbf16>, vector<64x64xbf16>, vector<16x64xf32> -> vector<16x64xf32>
    %14 = arith.addf %8, %13 : vector<16x64xf32>
    %c0_13 = arith.constant 0 : index
    %c18 = arith.constant 18 : index
    %c0_14 = arith.constant 0 : index
    %15 = vector.load %arg1[%c0_13, %c18, %c0_14] : memref<1x48x64xbf16, #tpu.memory_space<vmem>>, vector<1x16x64xbf16>
    %16 = vector.shape_cast %15 : vector<1x16x64xbf16> to vector<16x64xbf16>
    %c2 = arith.constant 2 : index
    %c0_15 = arith.constant 0 : index
    %c0_16 = arith.constant 0 : index
    %17 = vector.load %arg3[%c2, %c0_15, %c0_16] : memref<9x64x64xbf16, #tpu.memory_space<vmem>>, vector<1x64x64xbf16>
    %18 = vector.shape_cast %17 : vector<1x64x64xbf16> to vector<64x64xbf16>
    %cst_17 = arith.constant dense<0.000000e+00> : vector<16x64xf32>
    %19 = tpu.matmul %16, %18, %cst_17 {dimension_numbers = #tpu.dot_dimension_numbers<[1], [0], [0], [1], [0, 0, 1, 1], [], []>} : vector<16x64xbf16>, vector<64x64xbf16>, vector<16x64xf32> -> vector<16x64xf32>
    %20 = arith.addf %14, %19 : vector<16x64xf32>
    %c0_18 = arith.constant 0 : index
    %c0_19 = arith.constant 0 : index
    %c0_20 = arith.constant 0 : index
    %21 = vector.load %arg5[%c0_18, %c0_19, %c0_20] : memref<3x4x64xf32, #tpu.memory_space<vmem>>, vector<1x4x64xf32>
    %22 = vector.shape_cast %21 : vector<1x4x64xf32> to vector<4x64xf32>
    %23 = vector.extract_strided_slice %22 {offsets = [0, 0], sizes = [1, 64], strides = [1, 1]} : vector<4x64xf32> to vector<1x64xf32>
    %24 = vector.broadcast %23 : vector<1x64xf32> to vector<16x64xf32>
    %25 = arith.mulf %20, %24 : vector<16x64xf32>
    %26 = vector.extract_strided_slice %22 {offsets = [1, 0], sizes = [1, 64], strides = [1, 1]} : vector<4x64xf32> to vector<1x64xf32>
    %27 = vector.broadcast %26 : vector<1x64xf32> to vector<16x64xf32>
    %28 = arith.addf %25, %27 : vector<16x64xf32>
    %cst_21 = arith.constant 0.000000e+00 : f32
    %29 = vector.broadcast %cst_21 : f32 to vector<16x64xf32>
    %30 = arith.maximumf %28, %29 : vector<16x64xf32>
    %31 = arith.truncf %30 : vector<16x64xf32> to vector<16x64xbf16>
    %c0_22 = arith.constant 0 : index
    %c0_23 = arith.constant 0 : index
    %c0_24 = arith.constant 0 : index
    %32 = vector.load %arg4[%c0_22, %c0_23, %c0_24] : memref<3x64x64xbf16, #tpu.memory_space<vmem>>, vector<1x64x64xbf16>
    %33 = vector.shape_cast %32 : vector<1x64x64xbf16> to vector<64x64xbf16>
    %cst_25 = arith.constant dense<0.000000e+00> : vector<16x64xf32>
    %34 = tpu.matmul %31, %33, %cst_25 {dimension_numbers = #tpu.dot_dimension_numbers<[1], [0], [0], [1], [0, 0, 1, 1], [], []>} : vector<16x64xbf16>, vector<64x64xbf16>, vector<16x64xf32> -> vector<16x64xf32>
    %35 = vector.extract_strided_slice %22 {offsets = [2, 0], sizes = [1, 64], strides = [1, 1]} : vector<4x64xf32> to vector<1x64xf32>
    %36 = vector.broadcast %35 : vector<1x64xf32> to vector<16x64xf32>
    %37 = arith.mulf %34, %36 : vector<16x64xf32>
    %38 = vector.extract_strided_slice %22 {offsets = [3, 0], sizes = [1, 64], strides = [1, 1]} : vector<4x64xf32> to vector<1x64xf32>
    %39 = vector.broadcast %38 : vector<1x64xf32> to vector<16x64xf32>
    %40 = arith.addf %37, %39 : vector<16x64xf32>
    %41 = arith.addf %1, %40 : vector<16x64xf32>
    %cst_26 = arith.constant 0.000000e+00 : f32
    %42 = vector.broadcast %cst_26 : f32 to vector<16x64xf32>
    %c0_27 = arith.constant 0 : index
    %c11 = arith.constant 11 : index
    %c0_28 = arith.constant 0 : index
    %43 = vector.load %arg1[%c0_27, %c11, %c0_28] : memref<1x48x64xbf16, #tpu.memory_space<vmem>>, vector<1x16x64xbf16>
    %44 = vector.shape_cast %43 : vector<1x16x64xbf16> to vector<16x64xbf16>
    %c3 = arith.constant 3 : index
    %c0_29 = arith.constant 0 : index
    %c0_30 = arith.constant 0 : index
    %45 = vector.load %arg3[%c3, %c0_29, %c0_30] : memref<9x64x64xbf16, #tpu.memory_space<vmem>>, vector<1x64x64xbf16>
    %46 = vector.shape_cast %45 : vector<1x64x64xbf16> to vector<64x64xbf16>
    %cst_31 = arith.constant dense<0.000000e+00> : vector<16x64xf32>
    %47 = tpu.matmul %44, %46, %cst_31 {dimension_numbers = #tpu.dot_dimension_numbers<[1], [0], [0], [1], [0, 0, 1, 1], [], []>} : vector<16x64xbf16>, vector<64x64xbf16>, vector<16x64xf32> -> vector<16x64xf32>
    %48 = arith.addf %42, %47 : vector<16x64xf32>
    %c0_32 = arith.constant 0 : index
    %c16_33 = arith.constant 16 : index
    %c0_34 = arith.constant 0 : index
    %49 = vector.load %arg1[%c0_32, %c16_33, %c0_34] : memref<1x48x64xbf16, #tpu.memory_space<vmem>>, vector<1x16x64xbf16>
    %50 = vector.shape_cast %49 : vector<1x16x64xbf16> to vector<16x64xbf16>
    %c4 = arith.constant 4 : index
    %c0_35 = arith.constant 0 : index
    %c0_36 = arith.constant 0 : index
    %51 = vector.load %arg3[%c4, %c0_35, %c0_36] : memref<9x64x64xbf16, #tpu.memory_space<vmem>>, vector<1x64x64xbf16>
    %52 = vector.shape_cast %51 : vector<1x64x64xbf16> to vector<64x64xbf16>
    %cst_37 = arith.constant dense<0.000000e+00> : vector<16x64xf32>
    %53 = tpu.matmul %50, %52, %cst_37 {dimension_numbers = #tpu.dot_dimension_numbers<[1], [0], [0], [1], [0, 0, 1, 1], [], []>} : vector<16x64xbf16>, vector<64x64xbf16>, vector<16x64xf32> -> vector<16x64xf32>
    %54 = arith.addf %48, %53 : vector<16x64xf32>
    %c0_38 = arith.constant 0 : index
    %c21 = arith.constant 21 : index
    %c0_39 = arith.constant 0 : index
    %55 = vector.load %arg1[%c0_38, %c21, %c0_39] : memref<1x48x64xbf16, #tpu.memory_space<vmem>>, vector<1x16x64xbf16>
    %56 = vector.shape_cast %55 : vector<1x16x64xbf16> to vector<16x64xbf16>
    %c5 = arith.constant 5 : index
    %c0_40 = arith.constant 0 : index
    %c0_41 = arith.constant 0 : index
    %57 = vector.load %arg3[%c5, %c0_40, %c0_41] : memref<9x64x64xbf16, #tpu.memory_space<vmem>>, vector<1x64x64xbf16>
    %58 = vector.shape_cast %57 : vector<1x64x64xbf16> to vector<64x64xbf16>
    %cst_42 = arith.constant dense<0.000000e+00> : vector<16x64xf32>
    %59 = tpu.matmul %56, %58, %cst_42 {dimension_numbers = #tpu.dot_dimension_numbers<[1], [0], [0], [1], [0, 0, 1, 1], [], []>} : vector<16x64xbf16>, vector<64x64xbf16>, vector<16x64xf32> -> vector<16x64xf32>
    %60 = arith.addf %54, %59 : vector<16x64xf32>
    %c1_43 = arith.constant 1 : index
    %c0_44 = arith.constant 0 : index
    %c0_45 = arith.constant 0 : index
    %61 = vector.load %arg5[%c1_43, %c0_44, %c0_45] : memref<3x4x64xf32, #tpu.memory_space<vmem>>, vector<1x4x64xf32>
    %62 = vector.shape_cast %61 : vector<1x4x64xf32> to vector<4x64xf32>
    %63 = vector.extract_strided_slice %62 {offsets = [0, 0], sizes = [1, 64], strides = [1, 1]} : vector<4x64xf32> to vector<1x64xf32>
    %64 = vector.broadcast %63 : vector<1x64xf32> to vector<16x64xf32>
    %65 = arith.mulf %60, %64 : vector<16x64xf32>
    %66 = vector.extract_strided_slice %62 {offsets = [1, 0], sizes = [1, 64], strides = [1, 1]} : vector<4x64xf32> to vector<1x64xf32>
    %67 = vector.broadcast %66 : vector<1x64xf32> to vector<16x64xf32>
    %68 = arith.addf %65, %67 : vector<16x64xf32>
    %cst_46 = arith.constant 0.000000e+00 : f32
    %69 = vector.broadcast %cst_46 : f32 to vector<16x64xf32>
    %70 = arith.maximumf %68, %69 : vector<16x64xf32>
    %71 = arith.truncf %70 : vector<16x64xf32> to vector<16x64xbf16>
    %c1_47 = arith.constant 1 : index
    %c0_48 = arith.constant 0 : index
    %c0_49 = arith.constant 0 : index
    %72 = vector.load %arg4[%c1_47, %c0_48, %c0_49] : memref<3x64x64xbf16, #tpu.memory_space<vmem>>, vector<1x64x64xbf16>
    %73 = vector.shape_cast %72 : vector<1x64x64xbf16> to vector<64x64xbf16>
    %cst_50 = arith.constant dense<0.000000e+00> : vector<16x64xf32>
    %74 = tpu.matmul %71, %73, %cst_50 {dimension_numbers = #tpu.dot_dimension_numbers<[1], [0], [0], [1], [0, 0, 1, 1], [], []>} : vector<16x64xbf16>, vector<64x64xbf16>, vector<16x64xf32> -> vector<16x64xf32>
    %75 = vector.extract_strided_slice %62 {offsets = [2, 0], sizes = [1, 64], strides = [1, 1]} : vector<4x64xf32> to vector<1x64xf32>
    %76 = vector.broadcast %75 : vector<1x64xf32> to vector<16x64xf32>
    %77 = arith.mulf %74, %76 : vector<16x64xf32>
    %78 = vector.extract_strided_slice %62 {offsets = [3, 0], sizes = [1, 64], strides = [1, 1]} : vector<4x64xf32> to vector<1x64xf32>
    %79 = vector.broadcast %78 : vector<1x64xf32> to vector<16x64xf32>
    %80 = arith.addf %77, %79 : vector<16x64xf32>
    %81 = arith.addf %41, %80 : vector<16x64xf32>
    %cst_51 = arith.constant 0.000000e+00 : f32
    %82 = vector.broadcast %cst_51 : f32 to vector<16x64xf32>
    %c0_52 = arith.constant 0 : index
    %c7 = arith.constant 7 : index
    %c0_53 = arith.constant 0 : index
    %83 = vector.load %arg1[%c0_52, %c7, %c0_53] : memref<1x48x64xbf16, #tpu.memory_space<vmem>>, vector<1x16x64xbf16>
    %84 = vector.shape_cast %83 : vector<1x16x64xbf16> to vector<16x64xbf16>
    %c6 = arith.constant 6 : index
    %c0_54 = arith.constant 0 : index
    %c0_55 = arith.constant 0 : index
    %85 = vector.load %arg3[%c6, %c0_54, %c0_55] : memref<9x64x64xbf16, #tpu.memory_space<vmem>>, vector<1x64x64xbf16>
    %86 = vector.shape_cast %85 : vector<1x64x64xbf16> to vector<64x64xbf16>
    %cst_56 = arith.constant dense<0.000000e+00> : vector<16x64xf32>
    %87 = tpu.matmul %84, %86, %cst_56 {dimension_numbers = #tpu.dot_dimension_numbers<[1], [0], [0], [1], [0, 0, 1, 1], [], []>} : vector<16x64xbf16>, vector<64x64xbf16>, vector<16x64xf32> -> vector<16x64xf32>
    %88 = arith.addf %82, %87 : vector<16x64xf32>
    %c0_57 = arith.constant 0 : index
    %c16_58 = arith.constant 16 : index
    %c0_59 = arith.constant 0 : index
    %89 = vector.load %arg1[%c0_57, %c16_58, %c0_59] : memref<1x48x64xbf16, #tpu.memory_space<vmem>>, vector<1x16x64xbf16>
    %90 = vector.shape_cast %89 : vector<1x16x64xbf16> to vector<16x64xbf16>
    %c7_60 = arith.constant 7 : index
    %c0_61 = arith.constant 0 : index
    %c0_62 = arith.constant 0 : index
    %91 = vector.load %arg3[%c7_60, %c0_61, %c0_62] : memref<9x64x64xbf16, #tpu.memory_space<vmem>>, vector<1x64x64xbf16>
    %92 = vector.shape_cast %91 : vector<1x64x64xbf16> to vector<64x64xbf16>
    %cst_63 = arith.constant dense<0.000000e+00> : vector<16x64xf32>
    %93 = tpu.matmul %90, %92, %cst_63 {dimension_numbers = #tpu.dot_dimension_numbers<[1], [0], [0], [1], [0, 0, 1, 1], [], []>} : vector<16x64xbf16>, vector<64x64xbf16>, vector<16x64xf32> -> vector<16x64xf32>
    %94 = arith.addf %88, %93 : vector<16x64xf32>
    %c0_64 = arith.constant 0 : index
    %c25 = arith.constant 25 : index
    %c0_65 = arith.constant 0 : index
    %95 = vector.load %arg1[%c0_64, %c25, %c0_65] : memref<1x48x64xbf16, #tpu.memory_space<vmem>>, vector<1x16x64xbf16>
    %96 = vector.shape_cast %95 : vector<1x16x64xbf16> to vector<16x64xbf16>
    %c8 = arith.constant 8 : index
    %c0_66 = arith.constant 0 : index
    %c0_67 = arith.constant 0 : index
    %97 = vector.load %arg3[%c8, %c0_66, %c0_67] : memref<9x64x64xbf16, #tpu.memory_space<vmem>>, vector<1x64x64xbf16>
    %98 = vector.shape_cast %97 : vector<1x64x64xbf16> to vector<64x64xbf16>
    %cst_68 = arith.constant dense<0.000000e+00> : vector<16x64xf32>
    %99 = tpu.matmul %96, %98, %cst_68 {dimension_numbers = #tpu.dot_dimension_numbers<[1], [0], [0], [1], [0, 0, 1, 1], [], []>} : vector<16x64xbf16>, vector<64x64xbf16>, vector<16x64xf32> -> vector<16x64xf32>
    %100 = arith.addf %94, %99 : vector<16x64xf32>
    %c2_69 = arith.constant 2 : index
    %c0_70 = arith.constant 0 : index
    %c0_71 = arith.constant 0 : index
    %101 = vector.load %arg5[%c2_69, %c0_70, %c0_71] : memref<3x4x64xf32, #tpu.memory_space<vmem>>, vector<1x4x64xf32>
    %102 = vector.shape_cast %101 : vector<1x4x64xf32> to vector<4x64xf32>
    %103 = vector.extract_strided_slice %102 {offsets = [0, 0], sizes = [1, 64], strides = [1, 1]} : vector<4x64xf32> to vector<1x64xf32>
    %104 = vector.broadcast %103 : vector<1x64xf32> to vector<16x64xf32>
    %105 = arith.mulf %100, %104 : vector<16x64xf32>
    %106 = vector.extract_strided_slice %102 {offsets = [1, 0], sizes = [1, 64], strides = [1, 1]} : vector<4x64xf32> to vector<1x64xf32>
    %107 = vector.broadcast %106 : vector<1x64xf32> to vector<16x64xf32>
    %108 = arith.addf %105, %107 : vector<16x64xf32>
    %cst_72 = arith.constant 0.000000e+00 : f32
    %109 = vector.broadcast %cst_72 : f32 to vector<16x64xf32>
    %110 = arith.maximumf %108, %109 : vector<16x64xf32>
    %111 = arith.truncf %110 : vector<16x64xf32> to vector<16x64xbf16>
    %c2_73 = arith.constant 2 : index
    %c0_74 = arith.constant 0 : index
    %c0_75 = arith.constant 0 : index
    %112 = vector.load %arg4[%c2_73, %c0_74, %c0_75] : memref<3x64x64xbf16, #tpu.memory_space<vmem>>, vector<1x64x64xbf16>
    %113 = vector.shape_cast %112 : vector<1x64x64xbf16> to vector<64x64xbf16>
    %cst_76 = arith.constant dense<0.000000e+00> : vector<16x64xf32>
    %114 = tpu.matmul %111, %113, %cst_76 {dimension_numbers = #tpu.dot_dimension_numbers<[1], [0], [0], [1], [0, 0, 1, 1], [], []>} : vector<16x64xbf16>, vector<64x64xbf16>, vector<16x64xf32> -> vector<16x64xf32>
    %115 = vector.extract_strided_slice %102 {offsets = [2, 0], sizes = [1, 64], strides = [1, 1]} : vector<4x64xf32> to vector<1x64xf32>
    %116 = vector.broadcast %115 : vector<1x64xf32> to vector<16x64xf32>
    %117 = arith.mulf %114, %116 : vector<16x64xf32>
    %118 = vector.extract_strided_slice %102 {offsets = [3, 0], sizes = [1, 64], strides = [1, 1]} : vector<4x64xf32> to vector<1x64xf32>
    %119 = vector.broadcast %118 : vector<1x64xf32> to vector<16x64xf32>
    %120 = arith.addf %117, %119 : vector<16x64xf32>
    %121 = arith.addf %81, %120 : vector<16x64xf32>
    %cst_77 = arith.constant 0.000000e+00 : f32
    %122 = vector.broadcast %cst_77 : f32 to vector<16x64xf32>
    %123 = arith.maximumf %121, %122 : vector<16x64xf32>
    %c0_78 = arith.constant 0 : index
    %c0_79 = arith.constant 0 : index
    %c0_80 = arith.constant 0 : index
    %124 = vector.load %arg6[%c0_78, %c0_79, %c0_80] : memref<1x16x64xf32, #tpu.memory_space<vmem>>, vector<1x16x64xf32>
    %125 = vector.shape_cast %124 : vector<1x16x64xf32> to vector<16x64xf32>
    %126 = vector.shape_cast %123 : vector<16x64xf32> to vector<1x16x64xf32>
    tpu.vector_store %arg6[%c0_78, %c0_79, %c0_80], %126 {strides = array<i32>} : memref<1x16x64xf32, #tpu.memory_space<vmem>>, vector<1x16x64xf32>,
    return
  }
  func.func @transform_0(%arg0: i32) -> (i32, i32, i32) {
    %c0_i32 = arith.constant 0 : i32
    %c0_i32_0 = arith.constant 0 : i32
    %c0_i32_1 = arith.constant 0 : i32
    return %arg0, %c0_i32, %c0_i32_0 : i32, i32, i32
  }
  func.func @transform_1(%arg0: i32) -> (i32, i32, i32) {
    %c0_i32 = arith.constant 0 : i32
    %c0_i32_0 = arith.constant 0 : i32
    %c0_i32_1 = arith.constant 0 : i32
    return %arg0, %c0_i32, %c0_i32_0 : i32, i32, i32
  }
  func.func @transform_2(%arg0: i32) -> (i32, i32, i32) {
    %c0_i32 = arith.constant 0 : i32
    %c0_i32_0 = arith.constant 0 : i32
    %c0_i32_1 = arith.constant 0 : i32
    %c0_i32_2 = arith.constant 0 : i32
    return %c0_i32, %c0_i32_0, %c0_i32_1 : i32, i32, i32
  }
  func.func @transform_3(%arg0: i32) -> (i32, i32, i32) {
    %c0_i32 = arith.constant 0 : i32
    %c0_i32_0 = arith.constant 0 : i32
    %c0_i32_1 = arith.constant 0 : i32
    %c0_i32_2 = arith.constant 0 : i32
    return %c0_i32, %c0_i32_0, %c0_i32_1 : i32, i32, i32
  }
  func.func @transform_4(%arg0: i32) -> (i32, i32, i32) {
    %c0_i32 = arith.constant 0 : i32
    %c0_i32_0 = arith.constant 0 : i32
    %c0_i32_1 = arith.constant 0 : i32
    %c0_i32_2 = arith.constant 0 : i32
    return %c0_i32, %c0_i32_0, %c0_i32_1 : i32, i32, i32
  }
  func.func @transform_5(%arg0: i32) -> (i32, i32, i32) {
    %c0_i32 = arith.constant 0 : i32
    %c0_i32_0 = arith.constant 0 : i32
    %c0_i32_1 = arith.constant 0 : i32
    return %arg0, %c0_i32, %c0_i32_0 : i32, i32, i32
  }
}

</mosaic_0001>

<bundles_post_ra>
// kernel: pfcu_forward_pallas.2
= control target key start
LH: loop header
LB: loop body
LE: loop exit
PB: predicated region body
PF: predicated region fallthrough
CT: control target
= control target key end

     0   :  { %s804_s15 = smov 0   ;;  %s921_s0 = inlined_call_operand.vmem [shape: f32[2,18,64], index: 0, kind: input, shape index: {}]   ;;  %s922_s1 = inlined_call_operand.vmem [shape: bf16[3,64,64], index: 1, kind: input, shape index: {}]   ;;  %s923_s2 = inlined_call_operand.vmem [shape: bf16[64,64], index: 2, kind: input, shape index: {}]   ;;  %s924_s3 = inlined_call_operand.vmem [shape: f32[4,64], index: 3, kind: input, shape index: {}]   ;;  %s925_s4 = inlined_call_operand.vmem [shape: bf16[2,48,64], index: 4, kind: output, shape index: {}]  }
   0x1 LB: > { %s617_s16 = sadd.s32 4294967295, %s774_s15   ;;  %p621_p0 = scmp.ge.s32.totalorder %s774_s15, 1  ;;  %s774_s15 = sphi %s804_s15, %s14_s15  }
   0x2   : > { %p162_p1 = scmp.lt.s32.totalorder %s774_s15, 3 }
   0x4   : > { %p163_p2 = pnand %p621_p0, %p162_p1 }
   0x5   : > { %v752_v0 = vld [vmem:[%s922_s1] sm:$0xff] (!%p163_p2)   ;;  %v776_v1 = vmov (!%p163_p2), 0.0   ;;  %v753_v2 = vld [vmem:[%s922_s1 + $0x8] sm:$0xff] (!%p163_p2)   ;;  %vm777_vm0 = vmmov (!%p163_p2), 0   ;;  %p188_p3 = scmp.lt.s32.totalorder (!%p163_p2), %s617_s16, 1  ;;  %v754_v4 = vld [vmem:[%s922_s1 + $0x10] sm:$0xff] (!%p163_p2)   ;;  %v442_v26 = vlaneseq (!%p163_p2) }
   0x6   : > { %166 = sbr.rel (%p163_p2) target bundleno = 485 (0x1e5), region = 36  ;;  %698 = vmatprep.subr.bf16.mxu0 (!%p163_p2), %v776_v1  ;;  %686 = vmatprep.subr.bf16.mxu1 (!%p163_p2), %v776_v1  ;;  %v756_v3 = vld [vmem:[%s922_s1 + $0x20] sm:$0xff] (!%p163_p2)   ;;  %v758_v5 = vld [vmem:[%s922_s1 + $0x28] sm:$0xff] (!%p163_p2)   ;;  %v755_v6 = vld [vmem:[%s922_s1 + $0x18] sm:$0xff] (!%p163_p2)   ;;  %vm246_vm1 = vcmask (!%p163_p2), 523264   ;;  %vm547_vm2 = vcmask (!%p163_p2), 519168  }
   0x7   : > { %699 = vmatpush3.bf16.msra.mxu0 (!%p163_p2), %v752_v0  ;;  %706 = vmatprep.mubr.msk.bf16.mxu0 (!%p163_p2), %vm777_vm0, %v776_v1  ;;  %v760_v8 = vld [vmem:[%s922_s1 + $0x30] sm:$0xff] (!%p163_p2)   ;;  %v757_v10 = vld [vmem:[%s922_s1 + $0x40] sm:$0xff] (!%p163_p2)   ;;  %v762_v12 = vld [vmem:[%s922_s1 + $0x38] sm:$0xff] (!%p163_p2)   ;;  %v443_v31 = vshrl.u32 (!%p163_p2), %v442_v26, 7  ;;  %v778_v50 = vmov (!%p163_p2), 0  }
   0x8   : > { %700 = vmatprep.subr.bf16.mxu0 (!%p163_p2), %v776_v1  ;;  %694 = vmatprep.mubr.msk.bf16.mxu1 (!%p163_p2), %vm777_vm0, %v776_v1  ;;  %v759_v16 = vld [vmem:[%s922_s1 + $0x48] sm:$0xff] (!%p163_p2)   ;;  %v761_v17 = vld [vmem:[%s922_s1 + $0x50] sm:$0xff] (!%p163_p2)   ;;  %v763_v18 = vld [vmem:[%s922_s1 + $0x58] sm:$0xff] (!%p163_p2)  }
   0x9   : > { %687 = vmatpush3.bf16.msra.mxu1 (!%p163_p2), %v756_v3  ;;  %v764_v22 = vld [vmem:[%s923_s2] sm:$0xff] (!%p163_p2)   ;;  %v765_v23 = vld [vmem:[%s923_s2 + $0x8] sm:$0xff] (!%p163_p2)   ;;  %v766_v24 = vld [vmem:[%s923_s2 + $0x10] sm:$0xff] (!%p163_p2)   ;;  %v444_v32 = vsub.s32 (!%p163_p2), 0, %v443_v31  ;;  %v450_v34 = vsub.s32 (!%p163_p2), 1, %v443_v31  ;;  %v535_v51 = vsub.s32 (!%p163_p2), 2, %v443_v31 }
   0xa   : > { %688 = vmatprep.subr.bf16.mxu1 (!%p163_p2), %v776_v1  ;;  %v767_v25 = vld [vmem:[%s923_s2 + $0x18] sm:$0xff] (!%p163_p2)   ;;  %v441_v33 = vld [vmem:[%s924_s3] sm:$0xf] (!%p163_p2)  ;;  %v541_v52 = vsub.s32 (!%p163_p2), 3, %v443_v31 }
   0xb   : > { %701 = vmatpush3.bf16.msra.mxu0 (!%p163_p2), %v753_v2  ;;  %v445_v35 = vrot.slane (!%p163_p2), %v441_v33, %v444_v32  ;;  %v451_v38 = vrot.slane (!%p163_p2), %v441_v33, %v450_v34  ;;  %v536_v53 = vrot.slane (!%p163_p2), %v441_v33, %v535_v51 }
   0xc   : > { %702 = vmatprep.subr.bf16.mxu0 (!%p163_p2), %v776_v1  ;;  %v542_v54 = vrot.slane (!%p163_p2), %v441_v33, %v541_v52 }
   0xd   : > { %s927_s16 = smov (!%p188_p3, %s617_s16), 1  ;;  %689 = vmatpush3.bf16.msra.mxu1 %v758_v5 }
   0xe   : > { %s740_s25 = smul.u32 24, %s927_s16  ;;  %690 = vmatprep.subr.bf16.mxu1 %v776_v1 }
   0xf   : > { %703 = vmatpush3.bf16.msra.mxu0 %v754_v4 }
  0x10   : > { %s847_s6 = scalar_lea.vmem %s921_s0, %s740_s25  ;;  %704 = vmatprep.subr.bf16.mxu0 %v776_v1  ;;  %s197_s8 = scalar_lea.vmem %s925_s4, %s740_s25 }
  0x11   : > { %v199_v7 = vld [vmem:[%s847_s6] sm:$0xff]  ;;  %v200_v9 = vld [vmem:[%s847_s6 + $0x8] sm:$0xff]  ;;  %691 = vmatpush3.bf16.msra.mxu1 %v760_v8  ;;  %548 = vst.msk [vmem:[%s197_s8] sm:$0xf] %vm547_vm2, %v778_v50  ;;  %549 = vst.msk [vmem:[%s197_s8 + $0x4] sm:$0xf] %vm547_vm2, %v778_v50 }
  0x12   : > { %v201_v11 = vpack.c.bf16 %v200_v9, %v199_v7  ;;  %v210_v13 = vld [vmem:[%s847_s6 + $0x1] sm:$0xff]  ;;  %v211_v14 = vld [vmem:[%s847_s6 + $0x9] sm:$0xff]  ;;  %692 = vmatprep.subr.bf16.mxu1 %v776_v1  ;;  %560 = vst.msk [vmem:[%s197_s8 + $0x10] sm:$0xf] %vm547_vm2, %v778_v50  ;;  %561 = vst.msk [vmem:[%s197_s8 + $0x14] sm:$0xf] %vm547_vm2, %v778_v50 }
  0x13   : > { %705 = vmatpush3.bf16.msra.mxu0 %v755_v6  ;;  %v212_v15 = vpack.c.bf16 %v211_v14, %v210_v13  ;;  %v359_v19 = vld [vmem:[%s847_s6 + $0x2] sm:$0xff]  ;;  %v360_v20 = vld [vmem:[%s847_s6 + $0xa] sm:$0xff] }
  0x14   : > { %710 = vmatprep.subr.bf16.mxu0 %v776_v1  ;;  %v361_v21 = vpack.c.bf16 %v360_v20, %v359_v19 }
  0x15   : > { %693 = vmatpush3.bf16.msra.mxu1 %v762_v12 }
  0x16   : > { %707 = vmatmul.mubr.msk.bf16.vlgmr.msra.gmra.mrb[0].mxu0 %vm246_vm1, %v201_v11  ;;  %722 = vmatprep.subr.bf16.mxu1 %v776_v1 }
  0x17   : > { %711 = vmatpush3.bf16.msra.mxu0 %v757_v10  ;;  %718 = vmatprep.mubr.msk.bf16.mxu0 %vm777_vm0, %v776_v1 }
  0x18   : > { %712 = vmatprep.subr.bf16.mxu0 %v776_v1  ;;  %695 = vmatmul.mubr.msk.bf16.vlgmr.msra.gmra.mrb[0].mxu1 %vm246_vm1, %v212_v15 }
  0x19   : > { %730 = vmatprep.mubr.msk.bf16.mxu1 %vm777_vm0, %v776_v1  ;;  %723 = vmatpush3.bf16.msra.mxu1 %v764_v22 }
  0x1a   : > { %724 = vmatprep.subr.bf16.mxu1 %v776_v1 }
  0x1b   : > { %713 = vmatpush3.bf16.msra.mxu0 %v759_v16 }
  0x1c   : > { %714 = vmatprep.subr.bf16.mxu0 %v776_v1 }
  0x1d   : > { %725 = vmatpush3.bf16.msra.mxu1 %v765_v23 }
  0x1e   : > { %726 = vmatprep.subr.bf16.mxu1 %v776_v1 }
  0x1f   : > { %715 = vmatpush3.bf16.msra.mxu0 %v761_v17 }
  0x20   : > { %716 = vmatprep.subr.bf16.mxu0 %v776_v1 }
  0x21   : > { %727 = vmatpush3.bf16.msra.mxu1 %v766_v24 }
  0x22   : > { %728 = vmatprep.subr.bf16.mxu1 %v776_v1 }
  0x23   : > { %717 = vmatpush3.bf16.msra.mxu0 %v763_v18 }
  0x25   : > { %729 = vmatpush3.bf16.msra.mxu1 %v767_v25 }
  0x26   : > { %719 = vmatmul.mubr.msk.bf16.vlgmr.msra.gmra.mrb[0].mxu0 %vm246_vm1, %v361_v21 }
  0xeb   : > { %v284_v27 = vpop.f32.mrb[0].mxu1 }
  0xec   : > { %v696_v28 = vpop.f32.mrb[1].mxu1 }
  0xed   : > { %v287_v29 = vpop.f32.mrb[2].mxu1 }
  0xee   : > { %v697_v30 = vpop.f32.mrb[3].mxu1 }
  0xf9   : > { %v432_v36 = vpop.f32.mrb[0].mxu0 }
  0xfa   : > { %v734_v37 = vadd.f32 %v432_v36, %v284_v27  ;;  %v720_v39 = vpop.f32.mrb[1].mxu0 }
  0xfb   : > { %v435_v40 = vpop.f32.mrb[2].mxu0 }
  0xfc   : > { %v446_v41 = vmul.f32 %v734_v37, %v445_v35  ;;  %v735_v42 = vadd.f32 %v435_v40, %v287_v29  ;;  %v721_v43 = vpop.f32.mrb[3].mxu0 }
  0xfe   : > { %v452_v44 = vadd.f32 %v451_v38, %v446_v41  ;;  %v447_v45 = vmul.f32 %v735_v42, %v445_v35 }
 0x100   : > { %v453_v46 = vadd.f32 %v451_v38, %v447_v45  ;;  %v454_v47 = vmax.f32 %v452_v44, 0.0 }
 0x102   : > { %v455_v48 = vmax.f32 %v453_v46, 0.0 }
 0x104   : > { %v456_v49 = vpack.c.bf16 %v455_v48, %v454_v47 }
 0x106   : > { %731 = vmatmul.mubr.msk.bf16.vlgmr.msra.gmra.mrb[4].mxu1 %vm246_vm1, %v456_v49 }
 0x1d9   : > { %v526_v55 = vpop.f32.mrb[4].mxu1 }
 0x1da   : > { %v537_v56 = vmul.f32 %v536_v53, %v526_v55  ;;  %v732_v57 = vpop.f32.mrb[5].mxu1 }
 0x1db   : > { %v529_v58 = vpop.f32.mrb[6].mxu1 }
 0x1dc   : > { %v543_v59 = vadd.f32 %v542_v54, %v537_v56  ;;  %v538_v60 = vmul.f32 %v536_v53, %v529_v58  ;;  %v733_v61 = vpop.f32.mrb[7].mxu1 }
 0x1de   : > { %v545_v62 = vmax.f32 %v543_v59, 0.0  ;;  %v544_v63 = vadd.f32 %v542_v54, %v538_v60 }
 0x1e0   : > { %v664_v0 = vpack.c.bf16 %v545_v62, %v545_v62  ;;  %v546_v1 = vmax.f32 %v544_v63, 0.0 }
 0x1e2   : > { %558 = vst.msk [vmem:[%s197_s8 + $0x8] sm:$0xf] %vm547_vm2, %v664_v0  ;;  %v665_v2 = vpack.c.bf16 %v546_v1, %v546_v1 }
 0x1e4   : > { %559 = vst.msk [vmem:[%s197_s8 + $0xc] sm:$0xf] %vm547_vm2, %v665_v2 }
 0x1e5 PF: > { %s14_s15 = sadd.s32 1, %s774_s15  }
 0x1e6   : > { %p11_p4 = scmp.ge.s32.totalorder %s14_s15, 4  }
 0x1e8   :  { %13 = sbr.rel (!%p11_p4) target bundleno = 1 (0x1), region = 68 }

// kernel: pfcu_forward_pallas.3
= control target key start
LH: loop header
LB: loop body
LE: loop exit
PB: predicated region body
PF: predicated region fallthrough
CT: control target
= control target key end

     0   :  { %s1978_s18 = smov 0   ;;  %s2310_s0 = inlined_call_operand.vmem [shape: bf16[2,48,64], index: 0, kind: input, shape index: {}]   ;;  %s2311_s1 = inlined_call_operand.vmem [shape: f32[2,18,64], index: 1, kind: input, shape index: {}]   ;;  %s2312_s2 = inlined_call_operand.vmem [shape: bf16[9,64,64], index: 2, kind: input, shape index: {}]   ;;  %s2313_s3 = inlined_call_operand.vmem [shape: bf16[3,64,64], index: 3, kind: input, shape index: {}]   ;;  %s2314_s4 = inlined_call_operand.vmem [shape: f32[3,4,64], index: 4, kind: input, shape index: {}]   ;;  %s2315_s5 = inlined_call_operand.vmem [shape: f32[2,16,64], index: 5, kind: output, shape index: {}]  }
   0x1 LB: > { %s1473_s19 = sadd.s32 4294967295, %s1944_s18   ;;  %p1477_p0 = scmp.ge.s32.totalorder %s1944_s18, 1  ;;  %s1944_s18 = sphi %s1978_s18, %s15_s18  }
   0x2   : > { %p197_p1 = scmp.lt.s32.totalorder %s1944_s18, 3 }
   0x4   : > { %p198_p2 = pnand %p1477_p0, %p197_p1 }
   0x5   : > { %v1877_v0 = vld [vmem:[%s2312_s2] sm:$0xff] (!%p198_p2)   ;;  %v1946_v1 = vmov (!%p198_p2), 0.0   ;;  %v1878_v2 = vld [vmem:[%s2312_s2 + $0x8] sm:$0xff] (!%p198_p2)   ;;  %vm1947_vm0 = vmmov (!%p198_p2), 0   ;;  %p230_p3 = scmp.lt.s32.totalorder (!%p198_p2), %s1473_s19, 1  ;;  %v1879_v4 = vld [vmem:[%s2312_s2 + $0x10] sm:$0xff] (!%p198_p2)   ;;  %v516_v33 = vlaneseq (!%p198_p2) }
   0x6   : > { %201 = sbr.rel (%p198_p2) target bundleno = 1026 (0x402), region = 40  ;;  %1712 = vmatprep.subr.bf16.mxu0 (!%p198_p2), %v1946_v1  ;;  %1700 = vmatprep.subr.bf16.mxu1 (!%p198_p2), %v1946_v1  ;;  %v1881_v3 = vld [vmem:[%s2312_s2 + $0x20] sm:$0xff] (!%p198_p2)   ;;  %v1886_v5 = vld [vmem:[%s2312_s2 + $0x28] sm:$0xff] (!%p198_p2)   ;;  %v1880_v6 = vld [vmem:[%s2312_s2 + $0x18] sm:$0xff] (!%p198_p2)   ;;  %vm298_vm1 = vcmask (!%p198_p2), 523264   ;;  %vm349_vm2 = vcmask (!%p198_p2), 1044480  }
   0x7   : > { %1713 = vmatpush3.bf16.msra.mxu0 (!%p198_p2), %v1877_v0  ;;  %1720 = vmatprep.mubr.msk.bf16.mxu0 (!%p198_p2), %vm1947_vm0, %v1946_v1  ;;  %v1888_v11 = vld [vmem:[%s2312_s2 + $0x30] sm:$0xff] (!%p198_p2)   ;;  %v1885_v14 = vld [vmem:[%s2312_s2 + $0x40] sm:$0xff] (!%p198_p2)   ;;  %v1890_v15 = vld [vmem:[%s2312_s2 + $0x38] sm:$0xff] (!%p198_p2)   ;;  %vm441_vm3 = vcmask (!%p198_p2), 1046528   ;;  %v2092_v38 = vshrl.u32 (!%p198_p2), %v516_v33, 7 }
   0x8   : > { %1714 = vmatprep.subr.bf16.mxu0 (!%p198_p2), %v1946_v1  ;;  %1708 = vmatprep.mubr.msk.bf16.mxu1 (!%p198_p2), %vm1947_vm0, %v1946_v1  ;;  %v1887_v22 = vld [vmem:[%s2312_s2 + $0x48] sm:$0xff] (!%p198_p2)   ;;  %v1889_v26 = vld [vmem:[%s2312_s2 + $0x50] sm:$0xff] (!%p198_p2)   ;;  %v1892_v27 = vld [vmem:[%s2312_s2 + $0x58] sm:$0xff] (!%p198_p2)   ;;  %vm712_vm4 = vsmask.f32 (!%p198_p2), 6400 }
   0x9   : > { %1701 = vmatpush3.bf16.msra.mxu1 (!%p198_p2), %v1881_v3  ;;  %v1896_v29 = vld [vmem:[%s2313_s3] sm:$0xff] (!%p198_p2)   ;;  %v1897_v30 = vld [vmem:[%s2313_s3 + $0x8] sm:$0xff] (!%p198_p2)   ;;  %v1898_v31 = vld [vmem:[%s2313_s3 + $0x10] sm:$0xff] (!%p198_p2)   ;;  %v2095_v39 = vsub.s32 (!%p198_p2), 0, %v2092_v38  ;;  %v2103_v41 = vsub.s32 (!%p198_p2), 1, %v2092_v38 }
   0xa   : > { %1702 = vmatprep.subr.bf16.mxu1 (!%p198_p2), %v1946_v1  ;;  %v1899_v32 = vld [vmem:[%s2313_s3 + $0x18] sm:$0xff] (!%p198_p2)   ;;  %v2100_v40 = vld [vmem:[%s2314_s4] sm:$0xf] (!%p198_p2)  ;;  %v1901_v58 = vld [vmem:[%s2312_s2 + $0x88] sm:$0xff] (!%p198_p2)   ;;  %vm815_vm5 = vsmask.f32 (!%p198_p2), 5376 }
   0xb   : > { %1715 = vmatpush3.bf16.msra.mxu0 (!%p198_p2), %v1878_v2  ;;  %v519_v42 = vrot.slane (!%p198_p2), %v2100_v40, %v2095_v39  ;;  %v525_v45 = vrot.slane (!%p198_p2), %v2100_v40, %v2103_v41  ;;  %v1900_v56 = vld [vmem:[%s2312_s2 + $0x80] sm:$0xff] (!%p198_p2)   ;;  %v1902_v59 = vld [vmem:[%s2312_s2 + $0x90] sm:$0xff] (!%p198_p2)   ;;  %v1903_v60 = vld [vmem:[%s2312_s2 + $0x98] sm:$0xff] (!%p198_p2)   ;;  %vm1105_vm6 = vsmask.f32 (!%p198_p2), 4352 }
   0xc   : > { %1716 = vmatprep.subr.bf16.mxu0 (!%p198_p2), %v1946_v1  ;;  %v1904_v63 = vld [vmem:[%s2312_s2 + $0x60] sm:$0xff] (!%p198_p2)   ;;  %v1905_v2 = vld [vmem:[%s2312_s2 + $0x68] sm:$0xff] (!%p198_p2)   ;;  %vm1211_vm7 = vsmask.f32 (!%p198_p2), 7424 }
   0xd   : > { %s2317_s19 = smov (!%p230_p3, %s1473_s19), 1  ;;  %1703 = vmatpush3.bf16.msra.mxu1 %v1886_v5 }
   0xe   : > { %s1866_s28 = smul.u32 24, %s2317_s19  ;;  %1704 = vmatprep.subr.bf16.mxu1 %v1946_v1  ;;  %s1639_s20 = sshll.u32 %s2317_s19, 4 }
   0xf   : > { %1717 = vmatpush3.bf16.msra.mxu0 %v1879_v4  ;;  %s244_s23 = scalar_lea.vmem %s2315_s5, %s1639_s20 }
  0x10   : > { %s2021_s10 = scalar_lea.vmem %s2310_s0, %s1866_s28  ;;  %1718 = vmatprep.subr.bf16.mxu0 %v1946_v1  ;;  %s239_s16 = scalar_lea.vmem %s2311_s1, %s1866_s28 }
  0x11   : > { %v248_v7 = vld [vmem:[%s2021_s10 + $0x4] sm:$0x8]  ;;  %v2025_v8 = vld [vmem:[%s2021_s10 + $0x8] sm:$0xf]  ;;  %v259_v16 = vld [vmem:[%s2021_s10 + $0xc] sm:$0xf]  ;;  %1705 = vmatpush3.bf16.msra.mxu1 %v1888_v11 }
  0x12   : > { %v1496_v9 = vcombine.low %v248_v7, %v2025_v8  ;;  %v1883_v10 = vld [vmem:[%s2021_s10 + $0xc] ss:$0 sps:$4 sm:$0x77]   ;;  %v421_v18 = vld [vmem:[%s2021_s10 + $0x8] sm:$0xe]  ;;  %1706 = vmatprep.subr.bf16.mxu1 %v1946_v1  ;;  %v2054_v23 = vcombine.low %v2025_v8, %v259_v16  ;;  %v1906_v7 = vld [vmem:[%s2312_s2 + $0x70] sm:$0xff]  }
  0x13   : > { %v351_v13 = vrot.slane %v1883_v10, 3  ;;  %1719 = vmatpush3.bf16.msra.mxu0 %v1880_v6  ;;  %v2043_v19 = vld [vmem:[%s2021_s10 + $0xc] sm:$0xf]  ;;  %v1894_v21 = vld [vmem:[%s2021_s10 + $0x10] ss:$0 sps:$4 sm:$0x11]  }
  0x14   : > { %v350_v12 = vrot.slane %v1496_v9, 3  ;;  %1724 = vmatprep.subr.bf16.mxu0 %v1946_v1  ;;  %v1511_v20 = vcombine.low %v421_v18, %v2043_v19  ;;  %v443_v25 = vrot.slane %v1894_v21, 1  ;;  %v621_v61 = vld [vmem:[%s2021_s10 + $0x4] sm:$0xe]  ;;  %v1910_v21 = vld [vmem:[%s2312_s2 + $0xa8] sm:$0xff]  }
  0x15   : > { %1707 = vmatpush3.bf16.msra.mxu1 %v1890_v15  ;;  %v1544_v62 = vcombine.low %v621_v61, %v2025_v8  ;;  %v1908_v0 = vld [vmem:[%s2021_s10 + $0xc] ss:$0 sps:$4 sm:$0x33]   ;;  %v798_v15 = vld [vmem:[%s2021_s10 + $0x8] sm:$0xc]  ;;  %v1909_v18 = vld [vmem:[%s2312_s2 + $0xa0] sm:$0xff]  }
  0x16   : > { %v352_v17 = vsel %vm349_vm2, %v350_v12, %v351_v13  ;;  %v442_v24 = vrot.slane %v1511_v20, 1  ;;  %1736 = vmatprep.subr.bf16.mxu1 %v1946_v1  ;;  %v722_v5 = vshrl.u32 %v1908_v0, 16  ;;  %v725_v6 = vshll.u32 %v1908_v0, 16  ;;  %v1907_v12 = vld [vmem:[%s2312_s2 + $0x78] sm:$0xff]  }
  0x17   : > { %1721 = vmatmul.mubr.msk.bf16.vlgmr.msra.gmra.mrb[0].mxu0 %vm298_vm1, %v352_v17  ;;  %v714_v3 = vshrl.u32 %v1544_v62, 16  ;;  %v717_v4 = vshll.u32 %v1544_v62, 16  ;;  %v1559_v16 = vcombine.low %v798_v15, %v2043_v19  ;;  %v1913_v20 = vld [vmem:[%s2021_s10 + $0x10] ss:$0 sps:$4 sm:$0x77]   ;;  %v1919_v62 = vld [vmem:[%s2312_s2 + $0xe8] sm:$0xff]  }
  0x18   : > { %1725 = vmatpush3.bf16.msra.mxu0 %v1885_v14  ;;  %1732 = vmatprep.mubr.msk.bf16.mxu0 %vm1947_vm0, %v1946_v1  ;;  %v444_v28 = vsel %vm441_vm3, %v442_v24, %v443_v25  ;;  %v724_v10 = vrot.slane %v722_v5, 1  ;;  %v727_v11 = vrot.slane %v725_v6, 2  ;;  %v825_v24 = vshrl.u32 %v1913_v20, 16  ;;  %v1921_v0 = vld [vmem:[%s2312_s2 + $0xf8] sm:$0xff]   ;;  %v1923_v5 = vld [vmem:[%s2312_s2 + $0xc8] sm:$0xff]  }
  0x19   : > { %1726 = vmatprep.subr.bf16.mxu0 %v1946_v1  ;;  %1709 = vmatmul.mubr.msk.bf16.vlgmr.msra.gmra.mrb[0].mxu1 %vm298_vm1, %v2054_v23  ;;  %v716_v8 = vrot.slane %v714_v3, 1  ;;  %v719_v9 = vrot.slane %v717_v4, 2  ;;  %v817_v19 = vshrl.u32 %v1559_v16, 16  ;;  %v828_v25 = vshll.u32 %v1913_v20, 16  ;;  %v1926_v3 = vld [vmem:[%s2021_s10] sm:$0xf8]  }
  0x1a   : > { %1744 = vmatprep.mubr.msk.bf16.mxu1 %vm1947_vm0, %v1946_v1  ;;  %1737 = vmatpush3.bf16.msra.mxu1 %v1896_v29  ;;  %v728_v14 = vor.u32 %v727_v11, %v724_v10  ;;  %v827_v29 = vrot.slane %v825_v24, 2  ;;  %v1927_v4 = vld [vmem:[%s2021_s10 + $0x8] ss:$0 sps:$4 sm:$0xff]   ;;  %v1107_v6 = vshrl.u32 %v1926_v3, 16  ;;  %v1932_v20 = vld [vmem:[%s2021_s10 + $0xc] sm:$0xff]  }
  0x1b   : > { %1738 = vmatprep.subr.bf16.mxu1 %v1946_v1  ;;  %v720_v13 = vor.u32 %v719_v9, %v716_v8  ;;  %v1115_v8 = vshrl.u32 %v1927_v4, 16  ;;  %v1118_v9 = vshll.u32 %v1927_v4, 16  ;;  %v1930_v24 = vld [vmem:[%s2312_s2 + $0x110] sm:$0xff]  }
  0x1c   : > { %1727 = vmatpush3.bf16.msra.mxu0 %v1887_v22  ;;  %v820_v22 = vshll.u32 %v1559_v16, 16  ;;  %v1109_v10 = vrot.slane %v1107_v6, 3 }
  0x1d   : > { %1728 = vmatprep.subr.bf16.mxu0 %v1946_v1  ;;  %v729_v17 = vsel %vm712_vm4, %v720_v13, %v728_v14  ;;  %v1120_v13 = vrot.slane %v1118_v9, 4  ;;  %v1925_v14 = vld [vmem:[%s2312_s2 + $0xd8] sm:$0xff]  }
  0x1e   : > { %1739 = vmatpush3.bf16.msra.mxu1 %v1897_v30  ;;  %v830_v30 = vrot.slane %v828_v25, 3  ;;  %v1213_v25 = vshrl.u32 %v1932_v20, 16 }
  0x1f   : > { %1740 = vmatprep.subr.bf16.mxu1 %v1946_v1 }
  0x20   : > { %1729 = vmatpush3.bf16.msra.mxu0 %v1889_v26  ;;  %v1911_v26 = vld [vmem:[%s2312_s2 + $0xb0] sm:$0xff]   ;;  %v831_v33 = vor.u32 %v830_v30, %v827_v29 }
  0x21   : > { %1730 = vmatprep.subr.bf16.mxu0 %v1946_v1 }
  0x22   : > { %1741 = vmatpush3.bf16.msra.mxu1 %v1898_v31  ;;  %v1912_v31 = vld [vmem:[%s2312_s2 + $0xb8] sm:$0xff]  }
  0x23   : > { %1742 = vmatprep.subr.bf16.mxu1 %v1946_v1 }
  0x24   : > { %1731 = vmatpush3.bf16.msra.mxu0 %v1892_v27  ;;  %v819_v27 = vrot.slane %v817_v19, 2  ;;  %v1933_v19 = vld [vmem:[%s2021_s10 + $0x14] ss:$0 sps:$4 sm:$0x11]  }
  0x25   : > { %1784 = vmatprep.subr.bf16.mxu0 %v1946_v1 }
  0x26   : > { %1743 = vmatpush3.bf16.msra.mxu1 %v1899_v32 }
  0x27   : > { %1733 = vmatmul.mubr.msk.bf16.vlgmr.msra.gmra.mrb[0].mxu0 %vm298_vm1, %v444_v28  ;;  %1748 = vmatprep.subr.bf16.mxu1 %v1946_v1  ;;  %v822_v28 = vrot.slane %v820_v22, 3  ;;  %v1215_v22 = vshll.u32 %v1932_v20, 16 }
  0x28   : > { %1792 = vmatprep.mubr.msk.bf16.mxu0 %vm1947_vm0, %v1946_v1 }
  0x29   : > { %v823_v32 = vor.u32 %v822_v28, %v819_v27  ;;  %v1220_v27 = vshll.u32 %v1933_v19, 16  ;;  %v1931_v28 = vld [vmem:[%s2312_s2 + $0x118] sm:$0xff]  }
  0x2b   : > { %v1222_v30 = vrot.slane %v1220_v27, 1 }
  0xec   : > { %v336_v34 = vpop.f32.mrb[0].mxu1 }
  0xed   : > { %v1710_v35 = vpop.f32.mrb[1].mxu1 }
  0xee   : > { %v339_v36 = vpop.f32.mrb[2].mxu1  ;;  %v1914_v35 = vld [vmem:[%s2313_s3 + $0x20] sm:$0xff]  }
  0xef   : > { %v1711_v37 = vpop.f32.mrb[3].mxu1  ;;  %1785 = vmatpush3.bf16.msra.mxu0 %v1914_v35  ;;  %v1937_v35 = vld [vmem:[%s2313_s3 + $0x58] sm:$0xff]  }
  0xf0   : > { %1786 = vmatprep.subr.bf16.mxu0 %v1946_v1  ;;  %v1916_v37 = vld [vmem:[%s2313_s3 + $0x30] sm:$0xff]  }
  0xfa   : > { %v506_v43 = vpop.f32.mrb[0].mxu0 }
  0xfb   : > { %v1844_v44 = vadd.f32 %v506_v43, %v336_v34  ;;  %v1734_v46 = vpop.f32.mrb[1].mxu0  ;;  %v832_v34 = vsel %vm815_vm5, %v823_v32, %v831_v33  ;;  %v1934_v32 = vld [vmem:[%s2313_s3 + $0x40] sm:$0xff]   ;;  %v1935_v33 = vld [vmem:[%s2313_s3 + $0x48] sm:$0xff]  }
  0xfc   : > { %v509_v47 = vpop.f32.mrb[2].mxu0 }
  0xfd   : > { %v520_v48 = vmul.f32 %v1844_v44, %v519_v42  ;;  %v1845_v49 = vadd.f32 %v509_v47, %v339_v36  ;;  %v1735_v50 = vpop.f32.mrb[3].mxu0  ;;  %v1915_v36 = vld [vmem:[%s2313_s3 + $0x28] sm:$0xff]   ;;  %v2199_v47 = vld [vmem:[%s2314_s4 + $0x4] sm:$0xf] }
  0xfe   : > { %1787 = vmatpush3.bf16.msra.mxu0 %v1915_v36  ;;  %v609_v36 = vsub.s32 2, %v2092_v38 }
  0xff   : > { %v526_v51 = vadd.f32 %v525_v45, %v520_v48  ;;  %v521_v52 = vmul.f32 %v1845_v49, %v519_v42  ;;  %1788 = vmatprep.subr.bf16.mxu0 %v1946_v1  ;;  %v1917_v42 = vld [vmem:[%s2313_s3 + $0x38] sm:$0xff]   ;;  %v908_v48 = vrot.slane %v2199_v47, %v2095_v39  ;;  %v914_v49 = vrot.slane %v2199_v47, %v2103_v41 }
 0x101   : > { %v527_v53 = vadd.f32 %v525_v45, %v521_v52  ;;  %v528_v54 = vmax.f32 %v526_v51, 0.0 }
 0x102   : > { %1789 = vmatpush3.bf16.msra.mxu0 %v1916_v37  ;;  %v610_v37 = vrot.slane %v2100_v40, %v609_v36 }
 0x103   : > { %v529_v55 = vmax.f32 %v527_v53, 0.0  ;;  %1790 = vmatprep.subr.bf16.mxu0 %v1946_v1 }
 0x105   : > { %v530_v57 = vpack.c.bf16 %v529_v55, %v528_v54 }
 0x106   : > { %1791 = vmatpush3.bf16.msra.mxu0 %v1917_v42  ;;  %v615_v42 = vsub.s32 3, %v2092_v38 }
 0x107   : > { %1745 = vmatmul.mubr.msk.bf16.vlgmr.msra.gmra.mrb[4].mxu1 %vm298_vm1, %v530_v57  ;;  %1796 = vmatprep.subr.bf16.mxu0 %v1946_v1 }
 0x108   : > { %1749 = vmatpush3.bf16.msra.mxu1 %v1900_v56  ;;  %1756 = vmatprep.mubr.msk.bf16.mxu1 %vm1947_vm0, %v1946_v1 }
 0x109   : > { %1750 = vmatprep.subr.bf16.mxu1 %v1946_v1 }
 0x10c   : > { %1751 = vmatpush3.bf16.msra.mxu1 %v1901_v58 }
 0x10d   : > { %1752 = vmatprep.subr.bf16.mxu1 %v1946_v1 }
 0x110   : > { %1753 = vmatpush3.bf16.msra.mxu1 %v1902_v59 }
 0x111   : > { %1754 = vmatprep.subr.bf16.mxu1 %v1946_v1 }
 0x114   : > { %1755 = vmatpush3.bf16.msra.mxu1 %v1903_v60  ;;  %v1918_v60 = vld [vmem:[%s2312_s2 + $0xe0] sm:$0xff]  }
 0x115   : > { %1760 = vmatprep.subr.bf16.mxu1 %v1946_v1 }
 0x117   : > { %1757 = vmatmul.mubr.msk.bf16.vlgmr.msra.gmra.mrb[8].mxu1 %vm298_vm1, %v2054_v23 }
 0x118   : > { %1761 = vmatpush3.bf16.msra.mxu1 %v1904_v63  ;;  %1768 = vmatprep.mubr.msk.bf16.mxu1 %vm1947_vm0, %v1946_v1  ;;  %v1920_v63 = vld [vmem:[%s2312_s2 + $0xf0] sm:$0xff]  }
 0x119   : > { %1762 = vmatprep.subr.bf16.mxu1 %v1946_v1 }
 0x11c   : > { %1763 = vmatpush3.bf16.msra.mxu1 %v1905_v2  ;;  %v1922_v2 = vld [vmem:[%s2312_s2 + $0xc0] sm:$0xff]  }
 0x11d   : > { %1764 = vmatprep.subr.bf16.mxu1 %v1946_v1 }
 0x120   : > { %1765 = vmatpush3.bf16.msra.mxu1 %v1906_v7  ;;  %v1110_v7 = vshll.u32 %v1926_v3, 16 }
 0x121   : > { %1766 = vmatprep.subr.bf16.mxu1 %v1946_v1 }
 0x122   : > { %v1112_v11 = vrot.slane %v1110_v7, 4 }
 0x124   : > { %1767 = vmatpush3.bf16.msra.mxu1 %v1907_v12  ;;  %v1117_v12 = vrot.slane %v1115_v8, 3  ;;  %v1113_v15 = vor.u32 %v1112_v11, %v1109_v10 }
 0x125   : > { %1772 = vmatprep.subr.bf16.mxu1 %v1946_v1 }
 0x126   : > { %v1121_v16 = vor.u32 %v1120_v13, %v1117_v12 }
 0x127   : > { %1769 = vmatmul.mubr.msk.bf16.vlgmr.msra.gmra.mrb[8].mxu1 %vm298_vm1, %v729_v17 }
 0x128   : > { %1773 = vmatpush3.bf16.msra.mxu1 %v1909_v18  ;;  %1780 = vmatprep.mubr.msk.bf16.mxu1 %vm1947_vm0, %v1946_v1  ;;  %v1122_v17 = vsel %vm1105_vm6, %v1113_v15, %v1121_v16  ;;  %v1928_v18 = vld [vmem:[%s2312_s2 + $0x100] sm:$0xff]  }
 0x129   : > { %1774 = vmatprep.subr.bf16.mxu1 %v1946_v1 }
 0x12c   : > { %1775 = vmatpush3.bf16.msra.mxu1 %v1910_v21  ;;  %v1929_v21 = vld [vmem:[%s2312_s2 + $0x108] sm:$0xff]  }
 0x12d   : > { %1776 = vmatprep.subr.bf16.mxu1 %v1946_v1 }
 0x130   : > { %1777 = vmatpush3.bf16.msra.mxu1 %v1911_v26  ;;  %v1217_v26 = vrot.slane %v1215_v22, 1 }
 0x131   : > { %1778 = vmatprep.subr.bf16.mxu1 %v1946_v1 }
 0x132   : > { %v1218_v29 = vor.u32 %v1217_v26, %v1213_v25 }
 0x134   : > { %1779 = vmatpush3.bf16.msra.mxu1 %v1912_v31  ;;  %v1223_v31 = vsel %vm1211_vm7, %v1218_v29, %v1222_v30 }
 0x135   : > { %1832 = vmatprep.subr.bf16.mxu1 %v1946_v1 }
 0x137   : > { %1781 = vmatmul.mubr.msk.bf16.vlgmr.msra.gmra.mrb[8].mxu1 %vm298_vm1, %v832_v34  ;;  %v1936_v34 = vld [vmem:[%s2313_s3 + $0x50] sm:$0xff]  }
 0x138   : > { %1840 = vmatprep.mubr.msk.bf16.mxu1 %vm1947_vm0, %v1946_v1  ;;  %1833 = vmatpush3.bf16.msra.mxu1 %v1934_v32 }
 0x139   : > { %1834 = vmatprep.subr.bf16.mxu1 %v1946_v1 }
 0x13c   : > { %1835 = vmatpush3.bf16.msra.mxu1 %v1935_v33 }
 0x13d   : > { %1836 = vmatprep.subr.bf16.mxu1 %v1946_v1 }
 0x140   : > { %1837 = vmatpush3.bf16.msra.mxu1 %v1936_v34 }
 0x141   : > { %1838 = vmatprep.subr.bf16.mxu1 %v1946_v1 }
 0x144   : > { %1839 = vmatpush3.bf16.msra.mxu1 %v1937_v35 }
 0x1da   : > { %v2192_v43 = vpop.f32.mrb[4].mxu1 }
 0x1db   : > { %v1746_v44 = vpop.f32.mrb[5].mxu1 }
 0x1dc   : > { %v2194_v45 = vpop.f32.mrb[6].mxu1  ;;  %v611_v44 = vmul.f32 %v610_v37, %v2192_v43  ;;  %v247_v43 = vld [vmem:[%s239_s16 + $0x9] sm:$0xff] }
 0x1dd   : > { %v1747_v46 = vpop.f32.mrb[7].mxu1 }
 0x1de   : > { %v616_v46 = vrot.slane %v2100_v40, %v615_v42 }
 0x20a   : > { %v894_v50 = vpop.f32.mrb[8].mxu1 }
 0x20b   : > { %v909_v51 = vmul.f32 %v908_v48, %v894_v50  ;;  %v1782_v52 = vpop.f32.mrb[9].mxu1  ;;  %v1006_v50 = vrot.slane %v2199_v47, %v615_v42 }
 0x20c   : > { %v897_v53 = vpop.f32.mrb[10].mxu1 }
 0x20d   : > { %v915_v54 = vadd.f32 %v914_v49, %v909_v51  ;;  %v910_v55 = vmul.f32 %v908_v48, %v897_v53  ;;  %v1783_v56 = vpop.f32.mrb[11].mxu1  ;;  %v1000_v48 = vrot.slane %v2199_v47, %v609_v36  ;;  %v246_v51 = vld [vmem:[%s239_s16 + $0x1] sm:$0xff] }
 0x20f   : > { %v916_v57 = vadd.f32 %v914_v49, %v910_v55  ;;  %v917_v58 = vmax.f32 %v915_v54, 0.0  ;;  %v617_v49 = vadd.f32 %v616_v46, %v611_v44 }
 0x211   : > { %v918_v59 = vmax.f32 %v916_v57, 0.0  ;;  %v619_v40 = vadd.f32 %v617_v49, %v246_v51 }
 0x213   : > { %v919_v61 = vpack.c.bf16 %v918_v59, %v917_v58 }
 0x215   : > { %1793 = vmatmul.mubr.msk.bf16.vlgmr.msra.gmra.mrb[4].mxu0 %vm298_vm1, %v919_v61 }
 0x216   : > { %1797 = vmatpush3.bf16.msra.mxu0 %v1918_v60  ;;  %1804 = vmatprep.mubr.msk.bf16.mxu0 %vm1947_vm0, %v1946_v1 }
 0x217   : > { %1798 = vmatprep.subr.bf16.mxu0 %v1946_v1 }
 0x21a   : > { %1799 = vmatpush3.bf16.msra.mxu0 %v1919_v62  ;;  %v1623_v62 = vld [vmem:[%s2314_s4 + $0x8] sm:$0xf] }
 0x21b   : > { %1800 = vmatprep.subr.bf16.mxu0 %v1946_v1  ;;  %v1299_v47 = vrot.slane %v1623_v62, %v2095_v39  ;;  %v1391_v11 = vrot.slane %v1623_v62, %v609_v36  ;;  %v1397_v12 = vrot.slane %v1623_v62, %v615_v42 }
 0x21e   : > { %1801 = vmatpush3.bf16.msra.mxu0 %v1920_v63  ;;  %v1305_v63 = vrot.slane %v1623_v62, %v2103_v41 }
 0x21f   : > { %1802 = vmatprep.subr.bf16.mxu0 %v1946_v1 }
 0x222   : > { %1803 = vmatpush3.bf16.msra.mxu0 %v1921_v0 }
 0x223   : > { %1808 = vmatprep.subr.bf16.mxu0 %v1946_v1 }
 0x225   : > { %1805 = vmatmul.mubr.msk.bf16.vlgmr.msra.gmra.mrb[8].mxu0 %vm298_vm1, %v2054_v23  ;;  %v1924_v23 = vld [vmem:[%s2312_s2 + $0xd0] sm:$0xff]  }
 0x226   : > { %1809 = vmatpush3.bf16.msra.mxu0 %v1922_v2  ;;  %1816 = vmatprep.mubr.msk.bf16.mxu0 %vm1947_vm0, %v1946_v1 }
 0x227   : > { %1810 = vmatprep.subr.bf16.mxu0 %v1946_v1 }
 0x22a   : > { %1811 = vmatpush3.bf16.msra.mxu0 %v1923_v5 }
 0x22b   : > { %1812 = vmatprep.subr.bf16.mxu0 %v1946_v1 }
 0x22e   : > { %1813 = vmatpush3.bf16.msra.mxu0 %v1924_v23 }
 0x22f   : > { %1814 = vmatprep.subr.bf16.mxu0 %v1946_v1 }
 0x232   : > { %1815 = vmatpush3.bf16.msra.mxu0 %v1925_v14 }
 0x233   : > { %1820 = vmatprep.subr.bf16.mxu0 %v1946_v1 }
 0x235   : > { %1817 = vmatmul.mubr.msk.bf16.vlgmr.msra.gmra.mrb[8].mxu0 %vm298_vm1, %v1122_v17 }
 0x236   : > { %1821 = vmatpush3.bf16.msra.mxu0 %v1928_v18  ;;  %1828 = vmatprep.mubr.msk.bf16.mxu0 %vm1947_vm0, %v1946_v1 }
 0x237   : > { %1822 = vmatprep.subr.bf16.mxu0 %v1946_v1 }
 0x23a   : > { %1823 = vmatpush3.bf16.msra.mxu0 %v1929_v21 }
 0x23b   : > { %1824 = vmatprep.subr.bf16.mxu0 %v1946_v1 }
 0x23e   : > { %1825 = vmatpush3.bf16.msra.mxu0 %v1930_v24 }
 0x23f   : > { %1826 = vmatprep.subr.bf16.mxu0 %v1946_v1  ;;  %v612_v1 = vmul.f32 %v610_v37, %v2194_v45 }
 0x241   : > { %v618_v53 = vadd.f32 %v616_v46, %v612_v1 }
 0x242   : > { %1827 = vmatpush3.bf16.msra.mxu0 %v1931_v28 }
 0x243   : > { %v620_v59 = vadd.f32 %v618_v53, %v247_v43 }
 0x245   : > { %1829 = vmatmul.mubr.msk.bf16.vlgmr.msra.gmra.mrb[8].mxu0 %vm298_vm1, %v1223_v31 }
 0x2e8   : > { %v990_v52 = vpop.f32.mrb[4].mxu0 }
 0x2e9   : > { %v1001_v38 = vmul.f32 %v1000_v48, %v990_v52  ;;  %v1794_v54 = vpop.f32.mrb[5].mxu0 }
 0x2ea   : > { %v993_v55 = vpop.f32.mrb[6].mxu0 }
 0x2eb   : > { %v1007_v56 = vadd.f32 %v1006_v50, %v1001_v38  ;;  %v1002_v57 = vmul.f32 %v1000_v48, %v993_v55  ;;  %v1795_v58 = vpop.f32.mrb[7].mxu0 }
 0x2ed   : > { %v1009_v60 = vadd.f32 %v1007_v56, %v619_v40  ;;  %v1008_v61 = vadd.f32 %v1006_v50, %v1002_v57 }
 0x2ef   : > { %v1010_v45 = vadd.f32 %v1008_v61, %v620_v59 }
 0x318   : > { %v1285_v0 = vpop.f32.mrb[8].mxu0 }
 0x319   : > { %v1300_v2 = vmul.f32 %v1299_v47, %v1285_v0  ;;  %v1830_v3 = vpop.f32.mrb[9].mxu0 }
 0x31a   : > { %v1288_v4 = vpop.f32.mrb[10].mxu0 }
 0x31b   : > { %v1306_v5 = vadd.f32 %v1305_v63, %v1300_v2  ;;  %v1301_v6 = vmul.f32 %v1299_v47, %v1288_v4  ;;  %v1831_v7 = vpop.f32.mrb[11].mxu0 }
 0x31d   : > { %v1307_v8 = vadd.f32 %v1305_v63, %v1301_v6  ;;  %v1308_v9 = vmax.f32 %v1306_v5, 0.0 }
 0x31f   : > { %v1309_v23 = vmax.f32 %v1307_v8, 0.0 }
 0x321   : > { %v1310_v10 = vpack.c.bf16 %v1309_v23, %v1308_v9 }
 0x323   : > { %1841 = vmatmul.mubr.msk.bf16.vlgmr.msra.gmra.mrb[12].mxu1 %vm298_vm1, %v1310_v10 }
 0x3f6   : > { %v1381_v13 = vpop.f32.mrb[12].mxu1 }
 0x3f7   : > { %v1392_v39 = vmul.f32 %v1391_v11, %v1381_v13  ;;  %v1842_v14 = vpop.f32.mrb[13].mxu1 }
 0x3f8   : > { %v1384_v41 = vpop.f32.mrb[14].mxu1 }
 0x3f9   : > { %v1398_v15 = vadd.f32 %v1397_v12, %v1392_v39  ;;  %v1393_v16 = vmul.f32 %v1391_v11, %v1384_v41  ;;  %v1843_v17 = vpop.f32.mrb[15].mxu1 }
 0x3fb   : > { %v1400_v18 = vadd.f32 %v1398_v15, %v1009_v60  ;;  %v1399_v20 = vadd.f32 %v1397_v12, %v1393_v16 }
 0x3fd   : > { %v1402_v21 = vmax.f32 %v1400_v18, 0.0  ;;  %v1401_v19 = vadd.f32 %v1399_v20, %v1010_v45 }
 0x3ff   : > { %1404 = vst.msk [vmem:[%s244_s23] sm:$0xff] %vm298_vm1, %v1402_v21  ;;  %v1403_v22 = vmax.f32 %v1401_v19, 0.0 }
 0x401   : > { %1405 = vst.msk [vmem:[%s244_s23 + $0x8] sm:$0xff] %vm298_vm1, %v1403_v22 }
 0x402 PF: > { %s15_s18 = sadd.s32 1, %s1944_s18  }
 0x403   : > { %p12_p4 = scmp.ge.s32.totalorder %s15_s18, 4  }
 0x405   :  { %14 = sbr.rel (!%p12_p4) target bundleno = 1 (0x1), region = 85 }

</bundles_post_ra>
